<compile_context>
chip_gen: v6e
topology: v6e:2x2x1
jax: 0.10.0
libtpu: 0.0.40
codegen_flags: <defaults>
</compile_context>

<pallas_src>
import math

import jax
import jax.numpy as jnp
from jax.experimental import pallas as pl
from jax.experimental.pallas import tpu as pltpu

# ---------------- model config (consistent with the PyTorch module) ----------
IMG_SIZE = 16        # img_size
PATCH = 4            # patch_size
IN_CH = 1            # in_channels
HIDDEN = 32          # hidden_dim
NUM_LAYERS = 2       # num_layers
NUM_HEADS = 4        # num_heads
TIME_EMB_DIM = 128   # time_emb_dim (forward hardcodes 128 for the sinusoid)
LN_EPS = 1e-5
OUT_PAD = 128        # lane-dense padded width of the final projection output

HEAD_DIM = HIDDEN // NUM_HEADS
N_PATCHES = (IMG_SIZE // PATCH) ** 2
CP2 = IN_CH * PATCH * PATCH
EMB_ROWS = CP2 + TIME_EMB_DIM + HIDDEN          # rows of the packed embed-weight slab

# rows of the packed (BIAS_ROWS, 128) bias / LayerNorm-parameter slab
ROW_PATCH_B = 0
ROW_TM_B1 = 1
ROW_TM_B2 = 2
ROW_NORM_G = 3
ROW_NORM_B = 4
ROW_HEAD_B = 5
ROW_LAYER_BASE = 6
LAYER_ROWS = 8
(OFF_LN1_G, OFF_LN1_B, OFF_BQKV, OFF_BO,
 OFF_LN2_G, OFF_LN2_B, OFF_FFN_B1, OFF_FFN_B2) = range(8)
BIAS_ROWS = 24       # 6 + NUM_LAYERS*8 = 22, rounded up to a sublane multiple

_INV_SQRT2 = 0.7071067811865476


def _gelu_exact(x):
    # PyTorch nn.GELU() / activation='gelu' default: exact erf form
    return 0.5 * x * (1.0 + jax.lax.erf(x * _INV_SQRT2))


def _layernorm(x, g, b):
    mean = jnp.mean(x, axis=-1, keepdims=True)
    xc = x - mean
    var = jnp.mean(xc * xc, axis=-1, keepdims=True)
    return xc * jax.lax.rsqrt(var + LN_EPS) * g + b


# ---------------- the fused per-batch-element forward kernel -----------------
def _fused_forward_kernel(
    patches_ref,   # (N, C*P*P)          this batch element's patches
    temb_ref,      # (1, 1, 128)         this batch element's sinusoid features
    embw_ref,      # (EMB_ROWS, D)       [patch_w ; tm_w1 ; tm_w2] along rows
    pos_ref,       # (N, D)
    attnw_ref,     # (L, D, 4D)          [WQ | WK | WV | WO] along lanes
    ffn1_ref,      # (L, D, 4D)
    ffn2_ref,      # (L, 4D, D)
    headw_ref,     # (D, OUT_PAD)        zero-padded to 128 lanes
    bias_ref,      # (BIAS_ROWS, 128)    packed biases / LN params
    o_ref,         # (N, OUT_PAD)
):
    f32 = jnp.float32
    N, D, H, Dh = N_PATCHES, HIDDEN, NUM_HEADS, HEAD_DIM
    scale = 1.0 / math.sqrt(Dh)

    bias = bias_ref[...]                                   # (BIAS_ROWS, 128)

    def vec(row, width=D):
        return bias[row:row + 1, 0:width]                  # (1, width)

    # --- patch embedding: Conv2d(C, D, kernel=P, stride=P) == patchify + matmul
    patch_w = embw_ref[0:CP2, :]                           # (CP2, D)
    x = jnp.dot(patches_ref[...], patch_w,
                preferred_element_type=f32) + vec(ROW_PATCH_B)        # (N, D)

    # --- time MLP on this batch element's single sinusoid row ---
    tm_w1 = embw_ref[CP2:CP2 + TIME_EMB_DIM, :]            # (128, D)
    tm_w2 = embw_ref[CP2 + TIME_EMB_DIM:EMB_ROWS, :]       # (D, D)
    t = jnp.dot(temb_ref[0], tm_w1, preferred_element_type=f32) + vec(ROW_TM_B1)
    t = _gelu_exact(t)
    t = jnp.dot(t, tm_w2, preferred_element_type=f32) + vec(ROW_TM_B2)  # (1, D)

    # x + pos_embed + t   (pos_drop is an inference-mode identity)
    x = x + pos_ref[...] + t

    # --- pre-LN transformer encoder layers (unrolled) ---
    for l in range(NUM_LAYERS):
        base = ROW_LAYER_BASE + l * LAYER_ROWS

        # ---- self-attention block ----
        xn = _layernorm(x, vec(base + OFF_LN1_G), vec(base + OFF_LN1_B))
        qkvo_w = attnw_ref[l]                              # (D, 4D) = [WQ|WK|WV|WO]
        # one lane-dense MXU matmul; last D lanes (xn @ WO) are simply unused
        qkv = jnp.dot(xn, qkvo_w, preferred_element_type=f32)
        qkv = qkv + bias[base + OFF_BQKV:base + OFF_BQKV + 1, :]        # (N, 4D)

        heads = []
        for h in range(H):
            lo = h * Dh
            qh = qkv[:, 0 * D + lo:0 * D + lo + Dh]
            kh = qkv[:, 1 * D + lo:1 * D + lo + Dh]
            vh = qkv[:, 2 * D + lo:2 * D + lo + Dh]
            s = jax.lax.dot_general(qh, kh, (((1,), (1,)), ((), ())),
                                    preferred_element_type=f32) * scale  # (N, N)
            s = s - jnp.max(s, axis=-1, keepdims=True)
            p = jnp.exp(s)
            p = p * pl.reciprocal(jnp.sum(p, axis=-1, keepdims=True), approx=True)
            heads.append(jnp.dot(p, vh, preferred_element_type=f32))     # (N, Dh)
        ctx = jnp.concatenate(heads, axis=-1)                             # (N, D)

        wo = qkvo_w[:, 3 * D:4 * D]                                       # (D, D)
        attn_out = jnp.dot(ctx, wo, preferred_element_type=f32) + vec(base + OFF_BO)
        x = x + attn_out

        # ---- feed-forward block ----
        xn2 = _layernorm(x, vec(base + OFF_LN2_G), vec(base + OFF_LN2_B))
        h1 = jnp.dot(xn2, ffn1_ref[l], preferred_element_type=f32)
        h1 = _gelu_exact(h1 + bias[base + OFF_FFN_B1:base + OFF_FFN_B1 + 1, :])
        h2 = jnp.dot(h1, ffn2_ref[l], preferred_element_type=f32) + vec(base + OFF_FFN_B2)
        x = x + h2

    # --- final LayerNorm + lane-dense (128-wide, zero-padded) output projection
    xf = _layernorm(x, vec(ROW_NORM_G), vec(ROW_NORM_B))
    o_ref[...] = (jnp.dot(xf, headw_ref[...], preferred_element_type=f32)
                  + bias[ROW_HEAD_B:ROW_HEAD_B + 1, :])


# ---------------- host-side glue (layout packaging / unpatchify only) --------
def get_timestep_embedding(timesteps, embedding_dim=128):
    half = embedding_dim // 2
    emb = math.log(10000.0) / (half - 1)
    emb = jnp.exp(jnp.arange(half, dtype=jnp.float32) * -emb)
    emb = timesteps.astype(jnp.float32)[:, None] * emb[None, :]
    return jnp.concatenate([jnp.sin(emb), jnp.cos(emb)], axis=1)          # (B, 128)


@jax.jit
def diffusion_qasa_forward(params, x, time):
    B, C, H, W = x.shape
    assert H == IMG_SIZE and W == IMG_SIZE and C == IN_CH
    P, D = PATCH, HIDDEN
    Hp, Wp = H // P, W // P
    N = Hp * Wp
    M = B * N

    # layout-only packaging (fused by XLA with the input reads)
    patches = (x.reshape(B, C, Hp, P, Wp, P)
                 .transpose(0, 2, 4, 1, 3, 5)              # (B, Hp, Wp, C, P, P)
                 .reshape(M, C * P * P))                   # (M, CP2)
    t_emb = get_timestep_embedding(time, TIME_EMB_DIM).reshape(B, 1, TIME_EMB_DIM)

    grid_spec = pltpu.PrefetchScalarGridSpec(
        num_scalar_prefetch=0,
        grid=(B,),
        in_specs=[
            pl.BlockSpec((N, C * P * P), lambda b: (b, 0)),             # patches
            pl.BlockSpec((1, 1, TIME_EMB_DIM), lambda b: (b, 0, 0)),    # time feats
            pl.BlockSpec((EMB_ROWS, D), lambda b: (0, 0)),              # embed weights
            pl.BlockSpec((N, D), lambda b: (0, 0)),                     # pos_embed
            pl.BlockSpec((NUM_LAYERS, D, 4 * D), lambda b: (0, 0, 0)),  # attn weights
            pl.BlockSpec((NUM_LAYERS, D, 4 * D), lambda b: (0, 0, 0)),  # ffn w1
            pl.BlockSpec((NUM_LAYERS, 4 * D, D), lambda b: (0, 0, 0)),  # ffn w2
            pl.BlockSpec((D, OUT_PAD), lambda b: (0, 0)),               # head weight
            pl.BlockSpec((BIAS_ROWS, 128), lambda b: (0, 0)),           # bias slab
        ],
        out_specs=pl.BlockSpec((N, OUT_PAD), lambda b: (b, 0)),
    )

    out_pad = pl.pallas_call(
        _fused_forward_kernel,
        out_shape=jax.ShapeDtypeStruct((M, OUT_PAD), jnp.float32),
        grid_spec=grid_spec,
        compiler_params=pltpu.CompilerParams(dimension_semantics=("parallel",)),
    )(patches, t_emb,
      params["embed_w"], params["pos_embed"], params["attn_w"],
      params["ffn_w1"], params["ffn_w2"], params["head_w"], params["bias"])

    # unpatchify: (B, N, P*P*C) -> (B, C, H, W)   (matches einsum 'bhwpqc->bchpwq')
    out = out_pad[:, :P * P * C].reshape(B, Hp, Wp, P, P, C)
    imgs = jnp.einsum("bhwpqc->bchpwq", out).reshape(B, C, Hp * P, Wp * P)
    return imgs


# ---------------- deterministic parameter init (kernel-ready packed layout) --
def init_params(key):
    D, P, C, L = HIDDEN, PATCH, IN_CH, NUM_LAYERS
    N = N_PATCHES
    keys = iter(jax.random.split(key, 4 + 4 * L + 1))

    def kaiming(k, fan_in, shape):
        bound = math.sqrt(6.0 / fan_in)
        return jax.random.uniform(k, shape, jnp.float32, -bound, bound)

    # [patch_w ; tm_w1 ; tm_w2] stacked along rows (all project to D lanes)
    patch_w = kaiming(next(keys), CP2, (CP2, D))        # Conv2d weight reshaped + T
    tm_w1 = kaiming(next(keys), TIME_EMB_DIM, (TIME_EMB_DIM, D))
    tm_w2 = kaiming(next(keys), D, (D, D))
    embed_w = jnp.concatenate([patch_w, tm_w1, tm_w2], axis=0)        # (EMB_ROWS, D)

    pos_embed = 0.02 * jax.random.normal(next(keys), (N, D), jnp.float32)

    attn_w, ffn_w1, ffn_w2 = [], [], []
    for _ in range(L):
        in_proj = kaiming(next(keys), D, (D, 3 * D))    # == in_proj_weight.T
        out_proj = kaiming(next(keys), D, (D, D))       # == out_proj.weight.T
        attn_w.append(jnp.concatenate([in_proj, out_proj], axis=1))   # (D, 4D)
        ffn_w1.append(kaiming(next(keys), D, (D, 4 * D)))
        ffn_w2.append(kaiming(next(keys), 4 * D, (4 * D, D)))

    # output head, zero-padded to a lane-dense 128-wide slab (real width P*P*C)
    head_w = kaiming(next(keys), D, (D, P * P * C))     # == output_proj.weight.T
    head_w = jnp.pad(head_w, ((0, 0), (0, OUT_PAD - P * P * C)))

    # packed bias / LayerNorm slab: every Linear bias is zero-init and every
    # LayerNorm is weight=1 / bias=0 in the reference module
    ones_d = jnp.pad(jnp.ones((D,), jnp.float32), (0, 128 - D))
    bias = jnp.zeros((BIAS_ROWS, 128), jnp.float32)
    bias = bias.at[ROW_NORM_G].set(ones_d)
    for l in range(L):
        base = ROW_LAYER_BASE + l * LAYER_ROWS
        bias = bias.at[base + OFF_LN1_G].set(ones_d)
        bias = bias.at[base + OFF_LN2_G].set(ones_d)

    return {
        "embed_w": embed_w,               # (EMB_ROWS, D)
        "pos_embed": pos_embed,           # (N, D)
        "attn_w": jnp.stack(attn_w),      # (L, D, 4D)   [WQ|WK|WV|WO]
        "ffn_w1": jnp.stack(ffn_w1),      # (L, D, 4D)
        "ffn_w2": jnp.stack(ffn_w2),      # (L, 4D, D)
        "head_w": head_w,                 # (D, OUT_PAD)
        "bias": bias,                     # (BIAS_ROWS, 128)
    }


# TODO(synk): QASALayer / QuantumEncoderLayer (PennyLane circuit) is only used when
# use_quantum=True; the default (and translated) path never executes it.

if __name__ == "__main__":
    key = jax.random.PRNGKey(0)
    pk, xk, _ = jax.random.split(key, 3)
    params = init_params(pk)
    x = jax.random.normal(xk, (2, IN_CH, IMG_SIZE, IMG_SIZE), jnp.float32)   # NCHW
    time = jnp.array([3, 47], dtype=jnp.int32)

    out = diffusion_qasa_forward(params, x, time)
    out = jax.block_until_ready(out)
    assert out.shape == (2, IN_CH, IMG_SIZE, IMG_SIZE) and out.dtype == jnp.float32
    assert bool(jnp.all(jnp.isfinite(out)))
    print("KERNEL_OK")
</pallas_src>

<mosaic_0001>
module attributes {stable_mosaic.version = 11 : i64} {
  func.func @_fused_forward_kernel(%arg0: i32, %arg1: memref<16x16xf32, #tpu.memory_space<vmem>>, %arg2: memref<1x1x128xf32, #tpu.memory_space<vmem>>, %arg3: memref<176x32xf32, #tpu.memory_space<vmem>>, %arg4: memref<16x32xf32, #tpu.memory_space<vmem>>, %arg5: memref<2x32x128xf32, #tpu.memory_space<vmem>>, %arg6: memref<2x32x128xf32, #tpu.memory_space<vmem>>, %arg7: memref<2x128x32xf32, #tpu.memory_space<vmem>>, %arg8: memref<32x128xf32, #tpu.memory_space<vmem>>, %arg9: memref<24x128xf32, #tpu.memory_space<vmem>>, %arg10: memref<16x128xf32, #tpu.memory_space<vmem>>) attributes {dimension_semantics = [#tpu.dimension_semantics<parallel>], iteration_bounds = array<i64: 2>, scalar_prefetch = 0 : i64, scratch_operands = 0 : i64, tpu.core_type = #tpu.core_type<tc>, window_params = [{transform_indices = @transform_0, window_bounds = array<i64: 16, 16>}, {transform_indices = @transform_1, window_bounds = array<i64: 1, 1, 128>}, {pipeline_mode = #tpu.pipeline_mode<synchronous>, transform_indices = @transform_2, window_bounds = array<i64: 176, 32>}, {pipeline_mode = #tpu.pipeline_mode<synchronous>, transform_indices = @transform_3, window_bounds = array<i64: 16, 32>}, {pipeline_mode = #tpu.pipeline_mode<synchronous>, transform_indices = @transform_4, window_bounds = array<i64: 2, 32, 128>}, {pipeline_mode = #tpu.pipeline_mode<synchronous>, transform_indices = @transform_5, window_bounds = array<i64: 2, 32, 128>}, {pipeline_mode = #tpu.pipeline_mode<synchronous>, transform_indices = @transform_6, window_bounds = array<i64: 2, 128, 32>}, {pipeline_mode = #tpu.pipeline_mode<synchronous>, transform_indices = @transform_7, window_bounds = array<i64: 32, 128>}, {pipeline_mode = #tpu.pipeline_mode<synchronous>, transform_indices = @transform_8, window_bounds = array<i64: 24, 128>}, {transform_indices = @transform_9, window_bounds = array<i64: 16, 128>}]} {
    %c0 = arith.constant 0 : index
    %c0_0 = arith.constant 0 : index
    %0 = vector.load %arg9[%c0, %c0_0] : memref<24x128xf32, #tpu.memory_space<vmem>>, vector<24x128xf32>
    %c0_1 = arith.constant 0 : index
    %c0_2 = arith.constant 0 : index
    %1 = vector.load %arg3[%c0_1, %c0_2] : memref<176x32xf32, #tpu.memory_space<vmem>>, vector<16x32xf32>
    %c0_3 = arith.constant 0 : index
    %c0_4 = arith.constant 0 : index
    %2 = vector.load %arg1[%c0_3, %c0_4] : memref<16x16xf32, #tpu.memory_space<vmem>>, vector<16x16xf32>
    %cst = arith.constant dense<0.000000e+00> : vector<16x32xf32>
    %3 = tpu.matmul %2, %1, %cst {dimension_numbers = #tpu.dot_dimension_numbers<[1], [0], [0], [1], [0, 0, 1, 1], [], []>} : vector<16x16xf32>, vector<16x32xf32>, vector<16x32xf32> -> vector<16x32xf32>
    %4 = vector.extract_strided_slice %0 {offsets = [0, 0], sizes = [1, 32], strides = [1, 1]} : vector<24x128xf32> to vector<1x32xf32>
    %5 = vector.broadcast %4 : vector<1x32xf32> to vector<16x32xf32>
    %6 = arith.addf %3, %5 : vector<16x32xf32>
    %c16 = arith.constant 16 : index
    %c0_5 = arith.constant 0 : index
    %7 = vector.load %arg3[%c16, %c0_5] : memref<176x32xf32, #tpu.memory_space<vmem>>, vector<128x32xf32>
    %c144 = arith.constant 144 : index
    %c0_6 = arith.constant 0 : index
    %8 = vector.load %arg3[%c144, %c0_6] : memref<176x32xf32, #tpu.memory_space<vmem>>, vector<32x32xf32>
    %c0_7 = arith.constant 0 : index
    %c0_8 = arith.constant 0 : index
    %c0_9 = arith.constant 0 : index
    %9 = vector.load %arg2[%c0_7, %c0_8, %c0_9] : memref<1x1x128xf32, #tpu.memory_space<vmem>>, vector<1x1x128xf32>
    %10 = vector.shape_cast %9 : vector<1x1x128xf32> to vector<1x128xf32>
    %cst_10 = arith.constant dense<0.000000e+00> : vector<1x32xf32>
    %11 = tpu.matmul %10, %7, %cst_10 {dimension_numbers = #tpu.dot_dimension_numbers<[1], [0], [0], [1], [0, 0, 1, 1], [], []>} : vector<1x128xf32>, vector<128x32xf32>, vector<1x32xf32> -> vector<1x32xf32>
    %12 = vector.extract_strided_slice %0 {offsets = [1, 0], sizes = [1, 32], strides = [1, 1]} : vector<24x128xf32> to vector<1x32xf32>
    %13 = arith.addf %11, %12 : vector<1x32xf32>
    %cst_11 = arith.constant 5.000000e-01 : f32
    %14 = vector.broadcast %cst_11 : f32 to vector<1x32xf32>
    %15 = arith.mulf %14, %13 : vector<1x32xf32>
    %cst_12 = arith.constant 0.707106769 : f32
    %16 = vector.broadcast %cst_12 : f32 to vector<1x32xf32>
    %17 = arith.mulf %13, %16 : vector<1x32xf32>
    %18 = math.erf %17 : vector<1x32xf32>
    %cst_13 = arith.constant 1.000000e+00 : f32
    %19 = vector.broadcast %cst_13 : f32 to vector<1x32xf32>
    %20 = arith.addf %19, %18 : vector<1x32xf32>
    %21 = arith.mulf %15, %20 : vector<1x32xf32>
    %cst_14 = arith.constant dense<0.000000e+00> : vector<1x32xf32>
    %22 = tpu.matmul %21, %8, %cst_14 {dimension_numbers = #tpu.dot_dimension_numbers<[1], [0], [0], [1], [0, 0, 1, 1], [], []>} : vector<1x32xf32>, vector<32x32xf32>, vector<1x32xf32> -> vector<1x32xf32>
    %23 = vector.extract_strided_slice %0 {offsets = [2, 0], sizes = [1, 32], strides = [1, 1]} : vector<24x128xf32> to vector<1x32xf32>
    %24 = arith.addf %22, %23 : vector<1x32xf32>
    %c0_15 = arith.constant 0 : index
    %c0_16 = arith.constant 0 : index
    %25 = vector.load %arg4[%c0_15, %c0_16] : memref<16x32xf32, #tpu.memory_space<vmem>>, vector<16x32xf32>
    %26 = arith.addf %6, %25 : vector<16x32xf32>
    %27 = vector.broadcast %24 : vector<1x32xf32> to vector<16x32xf32>
    %28 = arith.addf %26, %27 : vector<16x32xf32>
    %29 = vector.extract_strided_slice %0 {offsets = [6, 0], sizes = [1, 32], strides = [1, 1]} : vector<24x128xf32> to vector<1x32xf32>
    %30 = vector.extract_strided_slice %0 {offsets = [7, 0], sizes = [1, 32], strides = [1, 1]} : vector<24x128xf32> to vector<1x32xf32>
    %cst_17 = arith.constant dense<0.000000e+00> : vector<16xf32>
    %31 = vector.multi_reduction <add>, %28, %cst_17 [1] : vector<16x32xf32> to vector<16xf32>
    %32 = vector.shape_cast %31 : vector<16xf32> to vector<16x1xf32>
    %cst_18 = arith.constant 3.200000e+01 : f32
    %33 = vector.broadcast %cst_18 : f32 to vector<16x1xf32>
    %34 = arith.divf %32, %33 : vector<16x1xf32>
    %35 = vector.broadcast %34 : vector<16x1xf32> to vector<16x32xf32>
    %36 = arith.subf %28, %35 : vector<16x32xf32>
    %37 = arith.mulf %36, %36 : vector<16x32xf32>
    %cst_19 = arith.constant dense<0.000000e+00> : vector<16xf32>
    %38 = vector.multi_reduction <add>, %37, %cst_19 [1] : vector<16x32xf32> to vector<16xf32>
    %39 = vector.shape_cast %38 : vector<16xf32> to vector<16x1xf32>
    %cst_20 = arith.constant 3.200000e+01 : f32
    %40 = vector.broadcast %cst_20 : f32 to vector<16x1xf32>
    %41 = arith.divf %39, %40 : vector<16x1xf32>
    %cst_21 = arith.constant 9.99999974E-6 : f32
    %42 = vector.broadcast %cst_21 : f32 to vector<16x1xf32>
    %43 = arith.addf %41, %42 : vector<16x1xf32>
    %44 = math.rsqrt %43 : vector<16x1xf32>
    %45 = vector.broadcast %44 : vector<16x1xf32> to vector<16x32xf32>
    %46 = arith.mulf %36, %45 : vector<16x32xf32>
    %47 = vector.broadcast %29 : vector<1x32xf32> to vector<16x32xf32>
    %48 = arith.mulf %46, %47 : vector<16x32xf32>
    %49 = vector.broadcast %30 : vector<1x32xf32> to vector<16x32xf32>
    %50 = arith.addf %48, %49 : vector<16x32xf32>
    %c0_22 = arith.constant 0 : index
    %c0_23 = arith.constant 0 : index
    %c0_24 = arith.constant 0 : index
    %51 = vector.load %arg5[%c0_22, %c0_23, %c0_24] : memref<2x32x128xf32, #tpu.memory_space<vmem>>, vector<1x32x128xf32>
    %52 = vector.shape_cast %51 : vector<1x32x128xf32> to vector<32x128xf32>
    %cst_25 = arith.constant dense<0.000000e+00> : vector<16x128xf32>
    %53 = tpu.matmul %50, %52, %cst_25 {dimension_numbers = #tpu.dot_dimension_numbers<[1], [0], [0], [1], [0, 0, 1, 1], [], []>} : vector<16x32xf32>, vector<32x128xf32>, vector<16x128xf32> -> vector<16x128xf32>
    %54 = vector.extract_strided_slice %0 {offsets = [8, 0], sizes = [1, 128], strides = [1, 1]} : vector<24x128xf32> to vector<1x128xf32>
    %55 = vector.broadcast %54 : vector<1x128xf32> to vector<16x128xf32>
    %56 = arith.addf %53, %55 : vector<16x128xf32>
    %57 = vector.extract_strided_slice %56 {offsets = [0, 0], sizes = [16, 8], strides = [1, 1]} : vector<16x128xf32> to vector<16x8xf32>
    %58 = vector.extract_strided_slice %56 {offsets = [0, 32], sizes = [16, 8], strides = [1, 1]} : vector<16x128xf32> to vector<16x8xf32>
    %59 = vector.extract_strided_slice %56 {offsets = [0, 64], sizes = [16, 8], strides = [1, 1]} : vector<16x128xf32> to vector<16x8xf32>
    %cst_26 = arith.constant dense<0.000000e+00> : vector<16x16xf32>
    %60 = tpu.matmul %57, %58, %cst_26 {dimension_numbers = #tpu.dot_dimension_numbers<[1], [1], [0], [0], [0, 0, 1, 0], [], []>} : vector<16x8xf32>, vector<16x8xf32>, vector<16x16xf32> -> vector<16x16xf32>
    %cst_27 = arith.constant 0.353553385 : f32
    %61 = vector.broadcast %cst_27 : f32 to vector<16x16xf32>
    %62 = arith.mulf %60, %61 : vector<16x16xf32>
    %cst_28 = arith.constant dense<0xFF800000> : vector<16xf32>
    %63 = vector.multi_reduction <maximumf>, %62, %cst_28 [1] : vector<16x16xf32> to vector<16xf32>
    %64 = vector.shape_cast %63 : vector<16xf32> to vector<16x1xf32>
    %65 = vector.broadcast %64 : vector<16x1xf32> to vector<16x16xf32>
    %66 = arith.subf %62, %65 : vector<16x16xf32>
    %67 = math.exp %66 : vector<16x16xf32>
    %cst_29 = arith.constant dense<0.000000e+00> : vector<16xf32>
    %68 = vector.multi_reduction <add>, %67, %cst_29 [1] : vector<16x16xf32> to vector<16xf32>
    %69 = vector.shape_cast %68 : vector<16xf32> to vector<16x1xf32>
    %70 = tpu.reciprocal %69 {approx = true} : vector<16x1xf32> -> vector<16x1xf32>
    %71 = vector.broadcast %70 : vector<16x1xf32> to vector<16x16xf32>
    %72 = arith.mulf %67, %71 : vector<16x16xf32>
    %cst_30 = arith.constant dense<0.000000e+00> : vector<16x8xf32>
    %73 = tpu.matmul %72, %59, %cst_30 {dimension_numbers = #tpu.dot_dimension_numbers<[1], [0], [0], [1], [0, 0, 1, 1], [], []>} : vector<16x16xf32>, vector<16x8xf32>, vector<16x8xf32> -> vector<16x8xf32>
    %74 = vector.extract_strided_slice %56 {offsets = [0, 8], sizes = [16, 8], strides = [1, 1]} : vector<16x128xf32> to vector<16x8xf32>
    %75 = vector.extract_strided_slice %56 {offsets = [0, 40], sizes = [16, 8], strides = [1, 1]} : vector<16x128xf32> to vector<16x8xf32>
    %76 = vector.extract_strided_slice %56 {offsets = [0, 72], sizes = [16, 8], strides = [1, 1]} : vector<16x128xf32> to vector<16x8xf32>
    %cst_31 = arith.constant dense<0.000000e+00> : vector<16x16xf32>
    %77 = tpu.matmul %74, %75, %cst_31 {dimension_numbers = #tpu.dot_dimension_numbers<[1], [1], [0], [0], [0, 0, 1, 0], [], []>} : vector<16x8xf32>, vector<16x8xf32>, vector<16x16xf32> -> vector<16x16xf32>
    %cst_32 = arith.constant 0.353553385 : f32
    %78 = vector.broadcast %cst_32 : f32 to vector<16x16xf32>
    %79 = arith.mulf %77, %78 : vector<16x16xf32>
    %cst_33 = arith.constant dense<0xFF800000> : vector<16xf32>
    %80 = vector.multi_reduction <maximumf>, %79, %cst_33 [1] : vector<16x16xf32> to vector<16xf32>
    %81 = vector.shape_cast %80 : vector<16xf32> to vector<16x1xf32>
    %82 = vector.broadcast %81 : vector<16x1xf32> to vector<16x16xf32>
    %83 = arith.subf %79, %82 : vector<16x16xf32>
    %84 = math.exp %83 : vector<16x16xf32>
    %cst_34 = arith.constant dense<0.000000e+00> : vector<16xf32>
    %85 = vector.multi_reduction <add>, %84, %cst_34 [1] : vector<16x16xf32> to vector<16xf32>
    %86 = vector.shape_cast %85 : vector<16xf32> to vector<16x1xf32>
    %87 = tpu.reciprocal %86 {approx = true} : vector<16x1xf32> -> vector<16x1xf32>
    %88 = vector.broadcast %87 : vector<16x1xf32> to vector<16x16xf32>
    %89 = arith.mulf %84, %88 : vector<16x16xf32>
    %cst_35 = arith.constant dense<0.000000e+00> : vector<16x8xf32>
    %90 = tpu.matmul %89, %76, %cst_35 {dimension_numbers = #tpu.dot_dimension_numbers<[1], [0], [0], [1], [0, 0, 1, 1], [], []>} : vector<16x16xf32>, vector<16x8xf32>, vector<16x8xf32> -> vector<16x8xf32>
    %91 = vector.extract_strided_slice %56 {offsets = [0, 16], sizes = [16, 8], strides = [1, 1]} : vector<16x128xf32> to vector<16x8xf32>
    %92 = vector.extract_strided_slice %56 {offsets = [0, 48], sizes = [16, 8], strides = [1, 1]} : vector<16x128xf32> to vector<16x8xf32>
    %93 = vector.extract_strided_slice %56 {offsets = [0, 80], sizes = [16, 8], strides = [1, 1]} : vector<16x128xf32> to vector<16x8xf32>
    %cst_36 = arith.constant dense<0.000000e+00> : vector<16x16xf32>
    %94 = tpu.matmul %91, %92, %cst_36 {dimension_numbers = #tpu.dot_dimension_numbers<[1], [1], [0], [0], [0, 0, 1, 0], [], []>} : vector<16x8xf32>, vector<16x8xf32>, vector<16x16xf32> -> vector<16x16xf32>
    %cst_37 = arith.constant 0.353553385 : f32
    %95 = vector.broadcast %cst_37 : f32 to vector<16x16xf32>
    %96 = arith.mulf %94, %95 : vector<16x16xf32>
    %cst_38 = arith.constant dense<0xFF800000> : vector<16xf32>
    %97 = vector.multi_reduction <maximumf>, %96, %cst_38 [1] : vector<16x16xf32> to vector<16xf32>
    %98 = vector.shape_cast %97 : vector<16xf32> to vector<16x1xf32>
    %99 = vector.broadcast %98 : vector<16x1xf32> to vector<16x16xf32>
    %100 = arith.subf %96, %99 : vector<16x16xf32>
    %101 = math.exp %100 : vector<16x16xf32>
    %cst_39 = arith.constant dense<0.000000e+00> : vector<16xf32>
    %102 = vector.multi_reduction <add>, %101, %cst_39 [1] : vector<16x16xf32> to vector<16xf32>
    %103 = vector.shape_cast %102 : vector<16xf32> to vector<16x1xf32>
    %104 = tpu.reciprocal %103 {approx = true} : vector<16x1xf32> -> vector<16x1xf32>
    %105 = vector.broadcast %104 : vector<16x1xf32> to vector<16x16xf32>
    %106 = arith.mulf %101, %105 : vector<16x16xf32>
    %cst_40 = arith.constant dense<0.000000e+00> : vector<16x8xf32>
    %107 = tpu.matmul %106, %93, %cst_40 {dimension_numbers = #tpu.dot_dimension_numbers<[1], [0], [0], [1], [0, 0, 1, 1], [], []>} : vector<16x16xf32>, vector<16x8xf32>, vector<16x8xf32> -> vector<16x8xf32>
    %108 = vector.extract_strided_slice %56 {offsets = [0, 24], sizes = [16, 8], strides = [1, 1]} : vector<16x128xf32> to vector<16x8xf32>
    %109 = vector.extract_strided_slice %56 {offsets = [0, 56], sizes = [16, 8], strides = [1, 1]} : vector<16x128xf32> to vector<16x8xf32>
    %110 = vector.extract_strided_slice %56 {offsets = [0, 88], sizes = [16, 8], strides = [1, 1]} : vector<16x128xf32> to vector<16x8xf32>
    %cst_41 = arith.constant dense<0.000000e+00> : vector<16x16xf32>
    %111 = tpu.matmul %108, %109, %cst_41 {dimension_numbers = #tpu.dot_dimension_numbers<[1], [1], [0], [0], [0, 0, 1, 0], [], []>} : vector<16x8xf32>, vector<16x8xf32>, vector<16x16xf32> -> vector<16x16xf32>
    %cst_42 = arith.constant 0.353553385 : f32
    %112 = vector.broadcast %cst_42 : f32 to vector<16x16xf32>
    %113 = arith.mulf %111, %112 : vector<16x16xf32>
    %cst_43 = arith.constant dense<0xFF800000> : vector<16xf32>
    %114 = vector.multi_reduction <maximumf>, %113, %cst_43 [1] : vector<16x16xf32> to vector<16xf32>
    %115 = vector.shape_cast %114 : vector<16xf32> to vector<16x1xf32>
    %116 = vector.broadcast %115 : vector<16x1xf32> to vector<16x16xf32>
    %117 = arith.subf %113, %116 : vector<16x16xf32>
    %118 = math.exp %117 : vector<16x16xf32>
    %cst_44 = arith.constant dense<0.000000e+00> : vector<16xf32>
    %119 = vector.multi_reduction <add>, %118, %cst_44 [1] : vector<16x16xf32> to vector<16xf32>
    %120 = vector.shape_cast %119 : vector<16xf32> to vector<16x1xf32>
    %121 = tpu.reciprocal %120 {approx = true} : vector<16x1xf32> -> vector<16x1xf32>
    %122 = vector.broadcast %121 : vector<16x1xf32> to vector<16x16xf32>
    %123 = arith.mulf %118, %122 : vector<16x16xf32>
    %cst_45 = arith.constant dense<0.000000e+00> : vector<16x8xf32>
    %124 = tpu.matmul %123, %110, %cst_45 {dimension_numbers = #tpu.dot_dimension_numbers<[1], [0], [0], [1], [0, 0, 1, 1], [], []>} : vector<16x16xf32>, vector<16x8xf32>, vector<16x8xf32> -> vector<16x8xf32>
    %125 = tpu.concatenate %73, %90, %107, %124 in 1 : vector<16x8xf32>, vector<16x8xf32>, vector<16x8xf32>, vector<16x8xf32> -> vector<16x32xf32>
    %126 = vector.extract_strided_slice %52 {offsets = [0, 96], sizes = [32, 32], strides = [1, 1]} : vector<32x128xf32> to vector<32x32xf32>
    %cst_46 = arith.constant dense<0.000000e+00> : vector<16x32xf32>
    %127 = tpu.matmul %125, %126, %cst_46 {dimension_numbers = #tpu.dot_dimension_numbers<[1], [0], [0], [1], [0, 0, 1, 1], [], []>} : vector<16x32xf32>, vector<32x32xf32>, vector<16x32xf32> -> vector<16x32xf32>
    %128 = vector.extract_strided_slice %0 {offsets = [9, 0], sizes = [1, 32], strides = [1, 1]} : vector<24x128xf32> to vector<1x32xf32>
    %129 = vector.broadcast %128 : vector<1x32xf32> to vector<16x32xf32>
    %130 = arith.addf %127, %129 : vector<16x32xf32>
    %131 = arith.addf %28, %130 : vector<16x32xf32>
    %132 = vector.extract_strided_slice %0 {offsets = [10, 0], sizes = [1, 32], strides = [1, 1]} : vector<24x128xf32> to vector<1x32xf32>
    %133 = vector.extract_strided_slice %0 {offsets = [11, 0], sizes = [1, 32], strides = [1, 1]} : vector<24x128xf32> to vector<1x32xf32>
    %cst_47 = arith.constant dense<0.000000e+00> : vector<16xf32>
    %134 = vector.multi_reduction <add>, %131, %cst_47 [1] : vector<16x32xf32> to vector<16xf32>
    %135 = vector.shape_cast %134 : vector<16xf32> to vector<16x1xf32>
    %cst_48 = arith.constant 3.200000e+01 : f32
    %136 = vector.broadcast %cst_48 : f32 to vector<16x1xf32>
    %137 = arith.divf %135, %136 : vector<16x1xf32>
    %138 = vector.broadcast %137 : vector<16x1xf32> to vector<16x32xf32>
    %139 = arith.subf %131, %138 : vector<16x32xf32>
    %140 = arith.mulf %139, %139 : vector<16x32xf32>
    %cst_49 = arith.constant dense<0.000000e+00> : vector<16xf32>
    %141 = vector.multi_reduction <add>, %140, %cst_49 [1] : vector<16x32xf32> to vector<16xf32>
    %142 = vector.shape_cast %141 : vector<16xf32> to vector<16x1xf32>
    %cst_50 = arith.constant 3.200000e+01 : f32
    %143 = vector.broadcast %cst_50 : f32 to vector<16x1xf32>
    %144 = arith.divf %142, %143 : vector<16x1xf32>
    %cst_51 = arith.constant 9.99999974E-6 : f32
    %145 = vector.broadcast %cst_51 : f32 to vector<16x1xf32>
    %146 = arith.addf %144, %145 : vector<16x1xf32>
    %147 = math.rsqrt %146 : vector<16x1xf32>
    %148 = vector.broadcast %147 : vector<16x1xf32> to vector<16x32xf32>
    %149 = arith.mulf %139, %148 : vector<16x32xf32>
    %150 = vector.broadcast %132 : vector<1x32xf32> to vector<16x32xf32>
    %151 = arith.mulf %149, %150 : vector<16x32xf32>
    %152 = vector.broadcast %133 : vector<1x32xf32> to vector<16x32xf32>
    %153 = arith.addf %151, %152 : vector<16x32xf32>
    %c0_52 = arith.constant 0 : index
    %c0_53 = arith.constant 0 : index
    %c0_54 = arith.constant 0 : index
    %154 = vector.load %arg6[%c0_52, %c0_53, %c0_54] : memref<2x32x128xf32, #tpu.memory_space<vmem>>, vector<1x32x128xf32>
    %155 = vector.shape_cast %154 : vector<1x32x128xf32> to vector<32x128xf32>
    %cst_55 = arith.constant dense<0.000000e+00> : vector<16x128xf32>
    %156 = tpu.matmul %153, %155, %cst_55 {dimension_numbers = #tpu.dot_dimension_numbers<[1], [0], [0], [1], [0, 0, 1, 1], [], []>} : vector<16x32xf32>, vector<32x128xf32>, vector<16x128xf32> -> vector<16x128xf32>
    %157 = vector.extract_strided_slice %0 {offsets = [12, 0], sizes = [1, 128], strides = [1, 1]} : vector<24x128xf32> to vector<1x128xf32>
    %158 = vector.broadcast %157 : vector<1x128xf32> to vector<16x128xf32>
    %159 = arith.addf %156, %158 : vector<16x128xf32>
    %cst_56 = arith.constant 5.000000e-01 : f32
    %160 = vector.broadcast %cst_56 : f32 to vector<16x128xf32>
    %161 = arith.mulf %160, %159 : vector<16x128xf32>
    %cst_57 = arith.constant 0.707106769 : f32
    %162 = vector.broadcast %cst_57 : f32 to vector<16x128xf32>
    %163 = arith.mulf %159, %162 : vector<16x128xf32>
    %164 = math.erf %163 : vector<16x128xf32>
    %cst_58 = arith.constant 1.000000e+00 : f32
    %165 = vector.broadcast %cst_58 : f32 to vector<16x128xf32>
    %166 = arith.addf %165, %164 : vector<16x128xf32>
    %167 = arith.mulf %161, %166 : vector<16x128xf32>
    %c0_59 = arith.constant 0 : index
    %c0_60 = arith.constant 0 : index
    %c0_61 = arith.constant 0 : index
    %168 = vector.load %arg7[%c0_59, %c0_60, %c0_61] : memref<2x128x32xf32, #tpu.memory_space<vmem>>, vector<1x128x32xf32>
    %169 = vector.shape_cast %168 : vector<1x128x32xf32> to vector<128x32xf32>
    %cst_62 = arith.constant dense<0.000000e+00> : vector<16x32xf32>
    %170 = tpu.matmul %167, %169, %cst_62 {dimension_numbers = #tpu.dot_dimension_numbers<[1], [0], [0], [1], [0, 0, 1, 1], [], []>} : vector<16x128xf32>, vector<128x32xf32>, vector<16x32xf32> -> vector<16x32xf32>
    %171 = vector.extract_strided_slice %0 {offsets = [13, 0], sizes = [1, 32], strides = [1, 1]} : vector<24x128xf32> to vector<1x32xf32>
    %172 = vector.broadcast %171 : vector<1x32xf32> to vector<16x32xf32>
    %173 = arith.addf %170, %172 : vector<16x32xf32>
    %174 = arith.addf %131, %173 : vector<16x32xf32>
    %175 = vector.extract_strided_slice %0 {offsets = [14, 0], sizes = [1, 32], strides = [1, 1]} : vector<24x128xf32> to vector<1x32xf32>
    %176 = vector.extract_strided_slice %0 {offsets = [15, 0], sizes = [1, 32], strides = [1, 1]} : vector<24x128xf32> to vector<1x32xf32>
    %cst_63 = arith.constant dense<0.000000e+00> : vector<16xf32>
    %177 = vector.multi_reduction <add>, %174, %cst_63 [1] : vector<16x32xf32> to vector<16xf32>
    %178 = vector.shape_cast %177 : vector<16xf32> to vector<16x1xf32>
    %cst_64 = arith.constant 3.200000e+01 : f32
    %179 = vector.broadcast %cst_64 : f32 to vector<16x1xf32>
    %180 = arith.divf %178, %179 : vector<16x1xf32>
    %181 = vector.broadcast %180 : vector<16x1xf32> to vector<16x32xf32>
    %182 = arith.subf %174, %181 : vector<16x32xf32>
    %183 = arith.mulf %182, %182 : vector<16x32xf32>
    %cst_65 = arith.constant dense<0.000000e+00> : vector<16xf32>
    %184 = vector.multi_reduction <add>, %183, %cst_65 [1] : vector<16x32xf32> to vector<16xf32>
    %185 = vector.shape_cast %184 : vector<16xf32> to vector<16x1xf32>
    %cst_66 = arith.constant 3.200000e+01 : f32
    %186 = vector.broadcast %cst_66 : f32 to vector<16x1xf32>
    %187 = arith.divf %185, %186 : vector<16x1xf32>
    %cst_67 = arith.constant 9.99999974E-6 : f32
    %188 = vector.broadcast %cst_67 : f32 to vector<16x1xf32>
    %189 = arith.addf %187, %188 : vector<16x1xf32>
    %190 = math.rsqrt %189 : vector<16x1xf32>
    %191 = vector.broadcast %190 : vector<16x1xf32> to vector<16x32xf32>
    %192 = arith.mulf %182, %191 : vector<16x32xf32>
    %193 = vector.broadcast %175 : vector<1x32xf32> to vector<16x32xf32>
    %194 = arith.mulf %192, %193 : vector<16x32xf32>
    %195 = vector.broadcast %176 : vector<1x32xf32> to vector<16x32xf32>
    %196 = arith.addf %194, %195 : vector<16x32xf32>
    %c1 = arith.constant 1 : index
    %c0_68 = arith.constant 0 : index
    %c0_69 = arith.constant 0 : index
    %197 = vector.load %arg5[%c1, %c0_68, %c0_69] : memref<2x32x128xf32, #tpu.memory_space<vmem>>, vector<1x32x128xf32>
    %198 = vector.shape_cast %197 : vector<1x32x128xf32> to vector<32x128xf32>
    %cst_70 = arith.constant dense<0.000000e+00> : vector<16x128xf32>
    %199 = tpu.matmul %196, %198, %cst_70 {dimension_numbers = #tpu.dot_dimension_numbers<[1], [0], [0], [1], [0, 0, 1, 1], [], []>} : vector<16x32xf32>, vector<32x128xf32>, vector<16x128xf32> -> vector<16x128xf32>
    %200 = vector.extract_strided_slice %0 {offsets = [16, 0], sizes = [1, 128], strides = [1, 1]} : vector<24x128xf32> to vector<1x128xf32>
    %201 = vector.broadcast %200 : vector<1x128xf32> to vector<16x128xf32>
    %202 = arith.addf %199, %201 : vector<16x128xf32>
    %203 = vector.extract_strided_slice %202 {offsets = [0, 0], sizes = [16, 8], strides = [1, 1]} : vector<16x128xf32> to vector<16x8xf32>
    %204 = vector.extract_strided_slice %202 {offsets = [0, 32], sizes = [16, 8], strides = [1, 1]} : vector<16x128xf32> to vector<16x8xf32>
    %205 = vector.extract_strided_slice %202 {offsets = [0, 64], sizes = [16, 8], strides = [1, 1]} : vector<16x128xf32> to vector<16x8xf32>
    %cst_71 = arith.constant dense<0.000000e+00> : vector<16x16xf32>
    %206 = tpu.matmul %203, %204, %cst_71 {dimension_numbers = #tpu.dot_dimension_numbers<[1], [1], [0], [0], [0, 0, 1, 0], [], []>} : vector<16x8xf32>, vector<16x8xf32>, vector<16x16xf32> -> vector<16x16xf32>
    %cst_72 = arith.constant 0.353553385 : f32
    %207 = vector.broadcast %cst_72 : f32 to vector<16x16xf32>
    %208 = arith.mulf %206, %207 : vector<16x16xf32>
    %cst_73 = arith.constant dense<0xFF800000> : vector<16xf32>
    %209 = vector.multi_reduction <maximumf>, %208, %cst_73 [1] : vector<16x16xf32> to vector<16xf32>
    %210 = vector.shape_cast %209 : vector<16xf32> to vector<16x1xf32>
    %211 = vector.broadcast %210 : vector<16x1xf32> to vector<16x16xf32>
    %212 = arith.subf %208, %211 : vector<16x16xf32>
    %213 = math.exp %212 : vector<16x16xf32>
    %cst_74 = arith.constant dense<0.000000e+00> : vector<16xf32>
    %214 = vector.multi_reduction <add>, %213, %cst_74 [1] : vector<16x16xf32> to vector<16xf32>
    %215 = vector.shape_cast %214 : vector<16xf32> to vector<16x1xf32>
    %216 = tpu.reciprocal %215 {approx = true} : vector<16x1xf32> -> vector<16x1xf32>
    %217 = vector.broadcast %216 : vector<16x1xf32> to vector<16x16xf32>
    %218 = arith.mulf %213, %217 : vector<16x16xf32>
    %cst_75 = arith.constant dense<0.000000e+00> : vector<16x8xf32>
    %219 = tpu.matmul %218, %205, %cst_75 {dimension_numbers = #tpu.dot_dimension_numbers<[1], [0], [0], [1], [0, 0, 1, 1], [], []>} : vector<16x16xf32>, vector<16x8xf32>, vector<16x8xf32> -> vector<16x8xf32>
    %220 = vector.extract_strided_slice %202 {offsets = [0, 8], sizes = [16, 8], strides = [1, 1]} : vector<16x128xf32> to vector<16x8xf32>
    %221 = vector.extract_strided_slice %202 {offsets = [0, 40], sizes = [16, 8], strides = [1, 1]} : vector<16x128xf32> to vector<16x8xf32>
    %222 = vector.extract_strided_slice %202 {offsets = [0, 72], sizes = [16, 8], strides = [1, 1]} : vector<16x128xf32> to vector<16x8xf32>
    %cst_76 = arith.constant dense<0.000000e+00> : vector<16x16xf32>
    %223 = tpu.matmul %220, %221, %cst_76 {dimension_numbers = #tpu.dot_dimension_numbers<[1], [1], [0], [0], [0, 0, 1, 0], [], []>} : vector<16x8xf32>, vector<16x8xf32>, vector<16x16xf32> -> vector<16x16xf32>
    %cst_77 = arith.constant 0.353553385 : f32
    %224 = vector.broadcast %cst_77 : f32 to vector<16x16xf32>
    %225 = arith.mulf %223, %224 : vector<16x16xf32>
    %cst_78 = arith.constant dense<0xFF800000> : vector<16xf32>
    %226 = vector.multi_reduction <maximumf>, %225, %cst_78 [1] : vector<16x16xf32> to vector<16xf32>
    %227 = vector.shape_cast %226 : vector<16xf32> to vector<16x1xf32>
    %228 = vector.broadcast %227 : vector<16x1xf32> to vector<16x16xf32>
    %229 = arith.subf %225, %228 : vector<16x16xf32>
    %230 = math.exp %229 : vector<16x16xf32>
    %cst_79 = arith.constant dense<0.000000e+00> : vector<16xf32>
    %231 = vector.multi_reduction <add>, %230, %cst_79 [1] : vector<16x16xf32> to vector<16xf32>
    %232 = vector.shape_cast %231 : vector<16xf32> to vector<16x1xf32>
    %233 = tpu.reciprocal %232 {approx = true} : vector<16x1xf32> -> vector<16x1xf32>
    %234 = vector.broadcast %233 : vector<16x1xf32> to vector<16x16xf32>
    %235 = arith.mulf %230, %234 : vector<16x16xf32>
    %cst_80 = arith.constant dense<0.000000e+00> : vector<16x8xf32>
    %236 = tpu.matmul %235, %222, %cst_80 {dimension_numbers = #tpu.dot_dimension_numbers<[1], [0], [0], [1], [0, 0, 1, 1], [], []>} : vector<16x16xf32>, vector<16x8xf32>, vector<16x8xf32> -> vector<16x8xf32>
    %237 = vector.extract_strided_slice %202 {offsets = [0, 16], sizes = [16, 8], strides = [1, 1]} : vector<16x128xf32> to vector<16x8xf32>
    %238 = vector.extract_strided_slice %202 {offsets = [0, 48], sizes = [16, 8], strides = [1, 1]} : vector<16x128xf32> to vector<16x8xf32>
    %239 = vector.extract_strided_slice %202 {offsets = [0, 80], sizes = [16, 8], strides = [1, 1]} : vector<16x128xf32> to vector<16x8xf32>
    %cst_81 = arith.constant dense<0.000000e+00> : vector<16x16xf32>
    %240 = tpu.matmul %237, %238, %cst_81 {dimension_numbers = #tpu.dot_dimension_numbers<[1], [1], [0], [0], [0, 0, 1, 0], [], []>} : vector<16x8xf32>, vector<16x8xf32>, vector<16x16xf32> -> vector<16x16xf32>
    %cst_82 = arith.constant 0.353553385 : f32
    %241 = vector.broadcast %cst_82 : f32 to vector<16x16xf32>
    %242 = arith.mulf %240, %241 : vector<16x16xf32>
    %cst_83 = arith.constant dense<0xFF800000> : vector<16xf32>
    %243 = vector.multi_reduction <maximumf>, %242, %cst_83 [1] : vector<16x16xf32> to vector<16xf32>
    %244 = vector.shape_cast %243 : vector<16xf32> to vector<16x1xf32>
    %245 = vector.broadcast %244 : vector<16x1xf32> to vector<16x16xf32>
    %246 = arith.subf %242, %245 : vector<16x16xf32>
    %247 = math.exp %246 : vector<16x16xf32>
    %cst_84 = arith.constant dense<0.000000e+00> : vector<16xf32>
    %248 = vector.multi_reduction <add>, %247, %cst_84 [1] : vector<16x16xf32> to vector<16xf32>
    %249 = vector.shape_cast %248 : vector<16xf32> to vector<16x1xf32>
    %250 = tpu.reciprocal %249 {approx = true} : vector<16x1xf32> -> vector<16x1xf32>
    %251 = vector.broadcast %250 : vector<16x1xf32> to vector<16x16xf32>
    %252 = arith.mulf %247, %251 : vector<16x16xf32>
    %cst_85 = arith.constant dense<0.000000e+00> : vector<16x8xf32>
    %253 = tpu.matmul %252, %239, %cst_85 {dimension_numbers = #tpu.dot_dimension_numbers<[1], [0], [0], [1], [0, 0, 1, 1], [], []>} : vector<16x16xf32>, vector<16x8xf32>, vector<16x8xf32> -> vector<16x8xf32>
    %254 = vector.extract_strided_slice %202 {offsets = [0, 24], sizes = [16, 8], strides = [1, 1]} : vector<16x128xf32> to vector<16x8xf32>
    %255 = vector.extract_strided_slice %202 {offsets = [0, 56], sizes = [16, 8], strides = [1, 1]} : vector<16x128xf32> to vector<16x8xf32>
    %256 = vector.extract_strided_slice %202 {offsets = [0, 88], sizes = [16, 8], strides = [1, 1]} : vector<16x128xf32> to vector<16x8xf32>
    %cst_86 = arith.constant dense<0.000000e+00> : vector<16x16xf32>
    %257 = tpu.matmul %254, %255, %cst_86 {dimension_numbers = #tpu.dot_dimension_numbers<[1], [1], [0], [0], [0, 0, 1, 0], [], []>} : vector<16x8xf32>, vector<16x8xf32>, vector<16x16xf32> -> vector<16x16xf32>
    %cst_87 = arith.constant 0.353553385 : f32
    %258 = vector.broadcast %cst_87 : f32 to vector<16x16xf32>
    %259 = arith.mulf %257, %258 : vector<16x16xf32>
    %cst_88 = arith.constant dense<0xFF800000> : vector<16xf32>
    %260 = vector.multi_reduction <maximumf>, %259, %cst_88 [1] : vector<16x16xf32> to vector<16xf32>
    %261 = vector.shape_cast %260 : vector<16xf32> to vector<16x1xf32>
    %262 = vector.broadcast %261 : vector<16x1xf32> to vector<16x16xf32>
    %263 = arith.subf %259, %262 : vector<16x16xf32>
    %264 = math.exp %263 : vector<16x16xf32>
    %cst_89 = arith.constant dense<0.000000e+00> : vector<16xf32>
    %265 = vector.multi_reduction <add>, %264, %cst_89 [1] : vector<16x16xf32> to vector<16xf32>
    %266 = vector.shape_cast %265 : vector<16xf32> to vector<16x1xf32>
    %267 = tpu.reciprocal %266 {approx = true} : vector<16x1xf32> -> vector<16x1xf32>
    %268 = vector.broadcast %267 : vector<16x1xf32> to vector<16x16xf32>
    %269 = arith.mulf %264, %268 : vector<16x16xf32>
    %cst_90 = arith.constant dense<0.000000e+00> : vector<16x8xf32>
    %270 = tpu.matmul %269, %256, %cst_90 {dimension_numbers = #tpu.dot_dimension_numbers<[1], [0], [0], [1], [0, 0, 1, 1], [], []>} : vector<16x16xf32>, vector<16x8xf32>, vector<16x8xf32> -> vector<16x8xf32>
    %271 = tpu.concatenate %219, %236, %253, %270 in 1 : vector<16x8xf32>, vector<16x8xf32>, vector<16x8xf32>, vector<16x8xf32> -> vector<16x32xf32>
    %272 = vector.extract_strided_slice %198 {offsets = [0, 96], sizes = [32, 32], strides = [1, 1]} : vector<32x128xf32> to vector<32x32xf32>
    %cst_91 = arith.constant dense<0.000000e+00> : vector<16x32xf32>
    %273 = tpu.matmul %271, %272, %cst_91 {dimension_numbers = #tpu.dot_dimension_numbers<[1], [0], [0], [1], [0, 0, 1, 1], [], []>} : vector<16x32xf32>, vector<32x32xf32>, vector<16x32xf32> -> vector<16x32xf32>
    %274 = vector.extract_strided_slice %0 {offsets = [17, 0], sizes = [1, 32], strides = [1, 1]} : vector<24x128xf32> to vector<1x32xf32>
    %275 = vector.broadcast %274 : vector<1x32xf32> to vector<16x32xf32>
    %276 = arith.addf %273, %275 : vector<16x32xf32>
    %277 = arith.addf %174, %276 : vector<16x32xf32>
    %278 = vector.extract_strided_slice %0 {offsets = [18, 0], sizes = [1, 32], strides = [1, 1]} : vector<24x128xf32> to vector<1x32xf32>
    %279 = vector.extract_strided_slice %0 {offsets = [19, 0], sizes = [1, 32], strides = [1, 1]} : vector<24x128xf32> to vector<1x32xf32>
    %cst_92 = arith.constant dense<0.000000e+00> : vector<16xf32>
    %280 = vector.multi_reduction <add>, %277, %cst_92 [1] : vector<16x32xf32> to vector<16xf32>
    %281 = vector.shape_cast %280 : vector<16xf32> to vector<16x1xf32>
    %cst_93 = arith.constant 3.200000e+01 : f32
    %282 = vector.broadcast %cst_93 : f32 to vector<16x1xf32>
    %283 = arith.divf %281, %282 : vector<16x1xf32>
    %284 = vector.broadcast %283 : vector<16x1xf32> to vector<16x32xf32>
    %285 = arith.subf %277, %284 : vector<16x32xf32>
    %286 = arith.mulf %285, %285 : vector<16x32xf32>
    %cst_94 = arith.constant dense<0.000000e+00> : vector<16xf32>
    %287 = vector.multi_reduction <add>, %286, %cst_94 [1] : vector<16x32xf32> to vector<16xf32>
    %288 = vector.shape_cast %287 : vector<16xf32> to vector<16x1xf32>
    %cst_95 = arith.constant 3.200000e+01 : f32
    %289 = vector.broadcast %cst_95 : f32 to vector<16x1xf32>
    %290 = arith.divf %288, %289 : vector<16x1xf32>
    %cst_96 = arith.constant 9.99999974E-6 : f32
    %291 = vector.broadcast %cst_96 : f32 to vector<16x1xf32>
    %292 = arith.addf %290, %291 : vector<16x1xf32>
    %293 = math.rsqrt %292 : vector<16x1xf32>
    %294 = vector.broadcast %293 : vector<16x1xf32> to vector<16x32xf32>
    %295 = arith.mulf %285, %294 : vector<16x32xf32>
    %296 = vector.broadcast %278 : vector<1x32xf32> to vector<16x32xf32>
    %297 = arith.mulf %295, %296 : vector<16x32xf32>
    %298 = vector.broadcast %279 : vector<1x32xf32> to vector<16x32xf32>
    %299 = arith.addf %297, %298 : vector<16x32xf32>
    %c1_97 = arith.constant 1 : index
    %c0_98 = arith.constant 0 : index
    %c0_99 = arith.constant 0 : index
    %300 = vector.load %arg6[%c1_97, %c0_98, %c0_99] : memref<2x32x128xf32, #tpu.memory_space<vmem>>, vector<1x32x128xf32>
    %301 = vector.shape_cast %300 : vector<1x32x128xf32> to vector<32x128xf32>
    %cst_100 = arith.constant dense<0.000000e+00> : vector<16x128xf32>
    %302 = tpu.matmul %299, %301, %cst_100 {dimension_numbers = #tpu.dot_dimension_numbers<[1], [0], [0], [1], [0, 0, 1, 1], [], []>} : vector<16x32xf32>, vector<32x128xf32>, vector<16x128xf32> -> vector<16x128xf32>
    %303 = vector.extract_strided_slice %0 {offsets = [20, 0], sizes = [1, 128], strides = [1, 1]} : vector<24x128xf32> to vector<1x128xf32>
    %304 = vector.broadcast %303 : vector<1x128xf32> to vector<16x128xf32>
    %305 = arith.addf %302, %304 : vector<16x128xf32>
    %cst_101 = arith.constant 5.000000e-01 : f32
    %306 = vector.broadcast %cst_101 : f32 to vector<16x128xf32>
    %307 = arith.mulf %306, %305 : vector<16x128xf32>
    %cst_102 = arith.constant 0.707106769 : f32
    %308 = vector.broadcast %cst_102 : f32 to vector<16x128xf32>
    %309 = arith.mulf %305, %308 : vector<16x128xf32>
    %310 = math.erf %309 : vector<16x128xf32>
    %cst_103 = arith.constant 1.000000e+00 : f32
    %311 = vector.broadcast %cst_103 : f32 to vector<16x128xf32>
    %312 = arith.addf %311, %310 : vector<16x128xf32>
    %313 = arith.mulf %307, %312 : vector<16x128xf32>
    %c1_104 = arith.constant 1 : index
    %c0_105 = arith.constant 0 : index
    %c0_106 = arith.constant 0 : index
    %314 = vector.load %arg7[%c1_104, %c0_105, %c0_106] : memref<2x128x32xf32, #tpu.memory_space<vmem>>, vector<1x128x32xf32>
    %315 = vector.shape_cast %314 : vector<1x128x32xf32> to vector<128x32xf32>
    %cst_107 = arith.constant dense<0.000000e+00> : vector<16x32xf32>
    %316 = tpu.matmul %313, %315, %cst_107 {dimension_numbers = #tpu.dot_dimension_numbers<[1], [0], [0], [1], [0, 0, 1, 1], [], []>} : vector<16x128xf32>, vector<128x32xf32>, vector<16x32xf32> -> vector<16x32xf32>
    %317 = vector.extract_strided_slice %0 {offsets = [21, 0], sizes = [1, 32], strides = [1, 1]} : vector<24x128xf32> to vector<1x32xf32>
    %318 = vector.broadcast %317 : vector<1x32xf32> to vector<16x32xf32>
    %319 = arith.addf %316, %318 : vector<16x32xf32>
    %320 = arith.addf %277, %319 : vector<16x32xf32>
    %321 = vector.extract_strided_slice %0 {offsets = [3, 0], sizes = [1, 32], strides = [1, 1]} : vector<24x128xf32> to vector<1x32xf32>
    %322 = vector.extract_strided_slice %0 {offsets = [4, 0], sizes = [1, 32], strides = [1, 1]} : vector<24x128xf32> to vector<1x32xf32>
    %cst_108 = arith.constant dense<0.000000e+00> : vector<16xf32>
    %323 = vector.multi_reduction <add>, %320, %cst_108 [1] : vector<16x32xf32> to vector<16xf32>
    %324 = vector.shape_cast %323 : vector<16xf32> to vector<16x1xf32>
    %cst_109 = arith.constant 3.200000e+01 : f32
    %325 = vector.broadcast %cst_109 : f32 to vector<16x1xf32>
    %326 = arith.divf %324, %325 : vector<16x1xf32>
    %327 = vector.broadcast %326 : vector<16x1xf32> to vector<16x32xf32>
    %328 = arith.subf %320, %327 : vector<16x32xf32>
    %329 = arith.mulf %328, %328 : vector<16x32xf32>
    %cst_110 = arith.constant dense<0.000000e+00> : vector<16xf32>
    %330 = vector.multi_reduction <add>, %329, %cst_110 [1] : vector<16x32xf32> to vector<16xf32>
    %331 = vector.shape_cast %330 : vector<16xf32> to vector<16x1xf32>
    %cst_111 = arith.constant 3.200000e+01 : f32
    %332 = vector.broadcast %cst_111 : f32 to vector<16x1xf32>
    %333 = arith.divf %331, %332 : vector<16x1xf32>
    %cst_112 = arith.constant 9.99999974E-6 : f32
    %334 = vector.broadcast %cst_112 : f32 to vector<16x1xf32>
    %335 = arith.addf %333, %334 : vector<16x1xf32>
    %336 = math.rsqrt %335 : vector<16x1xf32>
    %337 = vector.broadcast %336 : vector<16x1xf32> to vector<16x32xf32>
    %338 = arith.mulf %328, %337 : vector<16x32xf32>
    %339 = vector.broadcast %321 : vector<1x32xf32> to vector<16x32xf32>
    %340 = arith.mulf %338, %339 : vector<16x32xf32>
    %341 = vector.broadcast %322 : vector<1x32xf32> to vector<16x32xf32>
    %342 = arith.addf %340, %341 : vector<16x32xf32>
    %c0_113 = arith.constant 0 : index
    %c0_114 = arith.constant 0 : index
    %343 = vector.load %arg8[%c0_113, %c0_114] : memref<32x128xf32, #tpu.memory_space<vmem>>, vector<32x128xf32>
    %cst_115 = arith.constant dense<0.000000e+00> : vector<16x128xf32>
    %344 = tpu.matmul %342, %343, %cst_115 {dimension_numbers = #tpu.dot_dimension_numbers<[1], [0], [0], [1], [0, 0, 1, 1], [], []>} : vector<16x32xf32>, vector<32x128xf32>, vector<16x128xf32> -> vector<16x128xf32>
    %345 = vector.extract_strided_slice %0 {offsets = [5, 0], sizes = [1, 128], strides = [1, 1]} : vector<24x128xf32> to vector<1x128xf32>
    %346 = vector.broadcast %345 : vector<1x128xf32> to vector<16x128xf32>
    %347 = arith.addf %344, %346 : vector<16x128xf32>
    %c0_116 = arith.constant 0 : index
    %c0_117 = arith.constant 0 : index
    %348 = vector.load %arg10[%c0_116, %c0_117] : memref<16x128xf32, #tpu.memory_space<vmem>>, vector<16x128xf32>
    tpu.vector_store %arg10[%c0_116, %c0_117], %347 {strides = array<i32>} : memref<16x128xf32, #tpu.memory_space<vmem>>, vector<16x128xf32>,
    return
  }
  func.func @transform_0(%arg0: i32) -> (i32, i32) {
    %c0_i32 = arith.constant 0 : i32
    %c0_i32_0 = arith.constant 0 : i32
    return %arg0, %c0_i32 : i32, i32
  }
  func.func @transform_1(%arg0: i32) -> (i32, i32, i32) {
    %c0_i32 = arith.constant 0 : i32
    %c0_i32_0 = arith.constant 0 : i32
    %c0_i32_1 = arith.constant 0 : i32
    return %arg0, %c0_i32, %c0_i32_0 : i32, i32, i32
  }
  func.func @transform_2(%arg0: i32) -> (i32, i32) {
    %c0_i32 = arith.constant 0 : i32
    %c0_i32_0 = arith.constant 0 : i32
    %c0_i32_1 = arith.constant 0 : i32
    return %c0_i32, %c0_i32_0 : i32, i32
  }
  func.func @transform_3(%arg0: i32) -> (i32, i32) {
    %c0_i32 = arith.constant 0 : i32
    %c0_i32_0 = arith.constant 0 : i32
    %c0_i32_1 = arith.constant 0 : i32
    return %c0_i32, %c0_i32_0 : i32, i32
  }
  func.func @transform_4(%arg0: i32) -> (i32, i32, i32) {
    %c0_i32 = arith.constant 0 : i32
    %c0_i32_0 = arith.constant 0 : i32
    %c0_i32_1 = arith.constant 0 : i32
    %c0_i32_2 = arith.constant 0 : i32
    return %c0_i32, %c0_i32_0, %c0_i32_1 : i32, i32, i32
  }
  func.func @transform_5(%arg0: i32) -> (i32, i32, i32) {
    %c0_i32 = arith.constant 0 : i32
    %c0_i32_0 = arith.constant 0 : i32
    %c0_i32_1 = arith.constant 0 : i32
    %c0_i32_2 = arith.constant 0 : i32
    return %c0_i32, %c0_i32_0, %c0_i32_1 : i32, i32, i32
  }
  func.func @transform_6(%arg0: i32) -> (i32, i32, i32) {
    %c0_i32 = arith.constant 0 : i32
    %c0_i32_0 = arith.constant 0 : i32
    %c0_i32_1 = arith.constant 0 : i32
    %c0_i32_2 = arith.constant 0 : i32
    return %c0_i32, %c0_i32_0, %c0_i32_1 : i32, i32, i32
  }
  func.func @transform_7(%arg0: i32) -> (i32, i32) {
    %c0_i32 = arith.constant 0 : i32
    %c0_i32_0 = arith.constant 0 : i32
    %c0_i32_1 = arith.constant 0 : i32
    return %c0_i32, %c0_i32_0 : i32, i32
  }
  func.func @transform_8(%arg0: i32) -> (i32, i32) {
    %c0_i32 = arith.constant 0 : i32
    %c0_i32_0 = arith.constant 0 : i32
    %c0_i32_1 = arith.constant 0 : i32
    return %c0_i32, %c0_i32_0 : i32, i32
  }
  func.func @transform_9(%arg0: i32) -> (i32, i32) {
    %c0_i32 = arith.constant 0 : i32
    %c0_i32_0 = arith.constant 0 : i32
    return %arg0, %c0_i32 : i32, i32
  }
}

</mosaic_0001>

<bundles_post_ra>
// kernel: diffusion_qasa_forward.1
= control target key start
LH: loop header
LB: loop body
LE: loop exit
PB: predicated region body
PF: predicated region fallthrough
CT: control target
= control target key end

     0   :  { %s4203_s30 = smov 0   ;;  %s4935_s0 = inlined_call_operand.vmem [shape: f32[32,16], index: 0, kind: input, shape index: {}]   ;;  %s4936_s1 = inlined_call_operand.vmem [shape: f32[2,1,128], index: 1, kind: input, shape index: {}]   ;;  %s4937_s2 = inlined_call_operand.vmem [shape: f32[176,32], index: 2, kind: input, shape index: {}]   ;;  %s4938_s3 = inlined_call_operand.vmem [shape: f32[16,32], index: 3, kind: input, shape index: {}]   ;;  %s4939_s4 = inlined_call_operand.vmem [shape: f32[2,32,128], index: 4, kind: input, shape index: {}]   ;;  %s4940_s5 = inlined_call_operand.vmem [shape: f32[2,32,128], index: 5, kind: input, shape index: {}]   ;;  %s4941_s6 = inlined_call_operand.vmem [shape: f32[2,128,32], index: 6, kind: input, shape index: {}]   ;;  %s4942_s7 = inlined_call_operand.vmem [shape: f32[32,128], index: 7, kind: input, shape index: {}]   ;;  %s4943_s8 = inlined_call_operand.vmem [shape: f32[24,128], index: 8, kind: input, shape index: {}]   ;;  %s4944_s9 = inlined_call_operand.vmem [shape: f32[32,128], index: 9, kind: output, shape index: {}]  }
   0x1 LB: > { %s4209_s10 = sadd.s32 4294967295, %s4134_s30   ;;  %p3432_p0 = scmp.ge.s32.totalorder %s4134_s30, 1  ;;  %s4134_s30 = sphi %s4203_s30, %s19_s30  }
   0x2   : > { %p296_p1 = scmp.lt.s32.totalorder %s4134_s30, 3 }
   0x4   : > { %p297_p2 = pnand %p3432_p0, %p296_p1 }
   0x5   : > { %p341_p3 = scmp.lt.s32.totalorder (!%p297_p2), %s4209_s10, 1  ;;  %s3433_s28 = sshll.u32 (!%p297_p2), %s4209_s10, 1 }
   0x6   : > { %300 = sbr.rel (%p297_p2) target bundleno = 7830 (0x1e96), region = 56  ;;  %p336_p4 = scmp.lt.s32.totalorder (!%p297_p2), %s3433_s28, 3 }
   0x7   : > { %s4138_s23 = smov (!%p297_p2), 96   ;;  %s4139_s24 = smov (!%p297_p2), 64  }
   0x8   : > { %s4141_s26 = smov (!%p297_p2), 120   ;;  %s4142_s27 = smov (!%p297_p2), 80  }
   0x9   : > { %s4143_s29 = smov (!%p297_p2), 112   ;;  %s4144_s11 = smov (!%p297_p2), 48  }
   0xa   : > { %s4145_s13 = smov (!%p297_p2), 72   ;;  %s4146_s14 = smov (!%p297_p2), 104  }
   0xb   : > { %v458_v0 = vld [vmem:[%s4937_s2 + $0x88] sm:$0xff]  ;;  %v4136_v1 = vmov 0.0   ;;  %v457_v2 = vld [vmem:[%s4937_s2 + $0x80] sm:$0xff]  ;;  %vm4137_vm0 = vmmov 0   ;;  %v456_v3 = vld [vmem:[%s4937_s2 + $0x78] sm:$0xff]  ;;  %s342_s18 = scalar_select %p341_p3, %s4209_s10, 1  ;;  %v357_v36 = vlaneseq }
   0xc   : > { %3703 = vmatprep.subr.mxu1 %v4136_v1  ;;  %3735 = vmatprep.mubr.msk.f32.mxu1 %vm4137_vm0, %v4136_v1  ;;  %v455_v4 = vld [vmem:[%s4937_s2 + $0x70] sm:$0xff]  ;;  %v454_v5 = vld [vmem:[%s4937_s2 + $0x68] sm:$0xff]  ;;  %v453_v6 = vld [vmem:[%s4937_s2 + $0x60] sm:$0xff]  ;;  %s4960_s28 = smov (!%p336_p4, %s3433_s28), 3  ;;  %vm361_vm1 = vcmask 130048   ;;  %vm544_vm2 = vcmask 261120  }
   0xd   : > { %3704 = vmatpush3.msra.mxu1 %v458_v0  ;;  %v452_v7 = vld [vmem:[%s4937_s2 + $0x58] sm:$0xff]  ;;  %v451_v8 = vld [vmem:[%s4937_s2 + $0x50] sm:$0xff]  ;;  %v450_v9 = vld [vmem:[%s4937_s2 + $0x48] sm:$0xff]  ;;  %s343_s25 = scalar_lea.vmem %s4936_s1, %s342_s18  ;;  %s4945_s12 = sshll.u32 %s4960_s28, 3  ;;  %v4326_v37 = vshrl.u32 %v357_v36, 7  ;;  %vm762_vm3 = vcmask 64512  }
   0xe   : > { %3705 = vmatprep.subr.mxu1 %v4136_v1  ;;  %v449_v10 = vld [vmem:[%s4937_s2 + $0x40] sm:$0xff]  ;;  %v448_v11 = vld [vmem:[%s4937_s2 + $0x38] sm:$0xff]  ;;  %v447_v12 = vld [vmem:[%s4937_s2 + $0x30] sm:$0xff]  ;;  %s339_s10 = scalar_lea.vmem %s4935_s0, %s4945_s12  ;;  %s4147_s15 = smov 56   ;;  %vm1591_vm4 = vcmask 195584  }
   0xf   : > { %3706 = vmatpush3.msra.mxu1 %v457_v2  ;;  %v446_v13 = vld [vmem:[%s4937_s2 + $0x28] sm:$0xff]  ;;  %v445_v14 = vld [vmem:[%s4937_s2 + $0x20] sm:$0xff]  ;;  %v444_v15 = vld [vmem:[%s4937_s2 + $0x18] sm:$0xff]  ;;  %v4329_v38 = vsub.s32 0, %v4326_v37  ;;  %s4148_s16 = smov 40   ;;  %s4950_s17 = smov 16  }
  0x10   : > { %3707 = vmatprep.subr.mxu1 %v4136_v1  ;;  %v443_v16 = vld [vmem:[%s4937_s2 + $0x10] sm:$0xff]  ;;  %v463_v17 = vld [vmem:[%s343_s25] sm:$0x1]  ;;  %v354_v18 = vld [vmem:[%s4937_s2 + $0x8] sm:$0xff]  ;;  %s4140_s25 = smov 88   ;;  %s4948_s18 = smov 8  }
  0x11   : > { %3708 = vmatpush3.msra.mxu1 %v456_v3  ;;  %3696 = vmatprep.subr.mxu0 %v354_v18  ;;  %v353_v19 = vld [vmem:[%s4937_s2] sm:$0xff]  ;;  %v356_v21 = vld [vmem:[%s339_s10 + $0x8] sm:$0xff]  ;;  %v460_v24 = vld [vmem:[%s4937_s2 + $0x98] sm:$0xff]  ;;  %s4946_s19 = smov 24  }
  0x12   : > { %3709 = vmatprep.subr.mxu1 %v4136_v1  ;;  %3697 = vmatpush3.msra.mxu0 %v354_v18  ;;  %v355_v20 = vld [vmem:[%s339_s10] sm:$0xff]  ;;  %v462_v22 = vld [vmem:[%s4937_s2 + $0xa8] sm:$0xff]  ;;  %v459_v25 = vld [vmem:[%s4937_s2 + $0x90] sm:$0xff]  ;;  %s4952_s10 = smov 32  }
  0x13   : > { %3710 = vmatpush3.msra.mxu1 %v455_v4  ;;  %3698 = vmatprep.subr.mxu0 %v353_v19  ;;  %v461_v23 = vld [vmem:[%s4937_s2 + $0xa0] sm:$0xff]  ;;  %v619_v48 = vld [vmem:[%s4938_s3 + $0x8] sm:$0xff]  ;;  %v4356_v3 = vld [vmem:[%s4939_s4 + $0x18] sm:$0xff] }
  0x14   : > { %3711 = vmatprep.subr.mxu1 %v4136_v1  ;;  %3699 = vmatpush3.msra.mxu0 %v353_v19  ;;  %v4322_v26 = vld [vmem:[%s4943_s8] sm:$0xff]  ;;  %v4361_v4 = vld [vmem:[%s4939_s4 + $0x10] sm:$0xff] }
  0x15   : > { %3712 = vmatpush3.msra.mxu1 %v454_v5  ;;  %3700 = vmatprep.mubr.msk.f32.mxu0 %vm361_vm1, %v355_v20  ;;  %v465_v27 = vrot.slane %v4322_v26, 1  ;;  %v360_v40 = vrot.slane %v4322_v26, %v4329_v38  ;;  %v542_v42 = vrot.slane %v4322_v26, 2  ;;  %v618_v44 = vld [vmem:[%s4938_s3] sm:$0xff]  ;;  %v4368_v5 = vld [vmem:[%s4939_s4 + $0x8] sm:$0xff] }
  0x16   : > { %3713 = vmatprep.subr.mxu1 %v4136_v1  ;;  %3701 = vmatmul.mubr.msk.f32.vlgmr.msra.gmra.mxu0 %vm361_vm1, %v356_v21 }
  0x17   : > { %3714 = vmatpush3.msra.mxu1 %v453_v6  ;;  %3738 = vmatprep.subr.mxu0 %v4136_v1  ;;  %v4377_v6 = vld [vmem:[%s4939_s4] sm:$0xff] }
  0x18   : > { %3715 = vmatprep.subr.mxu1 %v4136_v1  ;;  %3746 = vmatprep.mubr.msk.f32.mxu0 %vm4137_vm0, %v4136_v1 }
  0x19   : > { %3716 = vmatpush3.msra.mxu1 %v452_v7  ;;  %3739 = vmatpush3.msra.mxu0 %v462_v22 }
  0x1a   : > { %3717 = vmatprep.subr.mxu1 %v4136_v1  ;;  %3740 = vmatprep.subr.mxu0 %v4136_v1 }
  0x1b   : > { %3718 = vmatpush3.msra.mxu1 %v451_v8  ;;  %3741 = vmatpush3.msra.mxu0 %v461_v23 }
  0x1c   : > { %3719 = vmatprep.subr.mxu1 %v4136_v1  ;;  %3742 = vmatprep.subr.mxu0 %v4136_v1 }
  0x1d   : > { %3720 = vmatpush3.msra.mxu1 %v450_v9  ;;  %3743 = vmatpush3.msra.mxu0 %v460_v24 }
  0x1e   : > { %3721 = vmatprep.subr.mxu1 %v4136_v1  ;;  %3744 = vmatprep.subr.mxu0 %v4136_v1 }
  0x1f   : > { %3722 = vmatpush3.msra.mxu1 %v449_v10  ;;  %3745 = vmatpush3.msra.mxu0 %v459_v25  ;;  %v4394_v25 = vld [vmem:[%s4943_s8 + $0x8] sm:$0xff] }
  0x20   : > { %3723 = vmatprep.subr.mxu1 %v4136_v1  ;;  %3749 = vmatprep.subr.mxu0 %v4356_v3 }
  0x21   : > { %3724 = vmatpush3.msra.mxu1 %v448_v11 }
  0x22   : > { %3725 = vmatprep.subr.mxu1 %v4136_v1 }
  0x23   : > { %3726 = vmatpush3.msra.mxu1 %v447_v12 }
  0x24   : > { %3727 = vmatprep.subr.mxu1 %v4136_v1 }
  0x25   : > { %3728 = vmatpush3.msra.mxu1 %v446_v13  ;;  %v657_v13 = vsub.s32 6, %v4326_v37 }
  0x26   : > { %3729 = vmatprep.subr.mxu1 %v4136_v1 }
  0x27   : > { %3730 = vmatpush3.msra.mxu1 %v445_v14  ;;  %v663_v14 = vsub.s32 7, %v4326_v37 }
  0x28   : > { %3731 = vmatprep.subr.mxu1 %v4136_v1 }
  0x29   : > { %3732 = vmatpush3.msra.mxu1 %v444_v15  ;;  %v658_v15 = vrot.slane %v4322_v26, %v657_v13  ;;  %v664_v18 = vrot.slane %v4322_v26, %v663_v14 }
  0x2a   : > { %3733 = vmatprep.subr.mxu1 %v4136_v1 }
  0x2b   : > { %3734 = vmatpush3.msra.mxu1 %v443_v16 }
  0x2c   : > { %3736 = vmatmul.mubr.f32.vlgmr.msra.gmra.mxu1 %v463_v17 }
  0xd6   : > { %v3702_v39 = vpop.f32.mrf.mxu0 }
  0xd7   : > { %v440_v46 = vadd.f32 %v3702_v39, %v360_v40 }
  0xd8   : > { %v434_v41 = vpop.f32.mrf.mxu0 }
  0xd9   : > { %v435_v43 = vadd.f32 %v434_v41, %v360_v40  ;;  %v621_v52 = vadd.f32 %v619_v48, %v440_v46 }
  0xdb   : > { %v620_v50 = vadd.f32 %v618_v44, %v435_v43 }
  0xec   : > { %v533_v28 = vpop.f32.mrf.mxu1 }
  0xed   : > { %v534_v29 = vadd.f32 %v533_v28, %v465_v27  ;;  %v674_v27 = vrot.slane %v4394_v25, %v4329_v38 }
  0xee   : > { %v3737_v30 = vpop.f32.mrf.mxu1 }
  0xef   : > { %v538_v31 = vmul.f32 0.70710677, %v534_v29  ;;  %v537_v33 = vmul.f32 0.5, %v534_v29 }
  0xf1   : > { %4033 = verf.f32 %v538_v31 }
  0xfe   : > { %v4034_v32 = vpop.eup %4033 }
  0xff   : > { %v540_v34 = vadd.f32 1.0, %v4034_v32 }
 0x101   : > { %v541_v35 = vmul.f32 %v540_v34, %v537_v33 }
 0x103   : > { %3747 = vmatmul.mubr.msk.f32.vlgmr.msra.gmra.mxu0 %vm544_vm2, %v541_v35 }
 0x104   : > { %3750 = vmatpush3.msra.mxu0 %v4356_v3 }
 0x105   : > { %3751 = vmatprep.subr.mxu0 %v4361_v4 }
 0x106   : > { %3752 = vmatpush3.msra.mxu0 %v4361_v4 }
 0x107   : > { %3753 = vmatprep.subr.mxu0 %v4368_v5 }
 0x108   : > { %3754 = vmatpush3.msra.mxu0 %v4368_v5 }
 0x109   : > { %3755 = vmatprep.subr.mxu0 %v4377_v6 }
 0x10a   : > { %3756 = vmatpush3.msra.mxu0 %v4377_v6 }
 0x1c3   : > { %v614_v45 = vpop.f32.mrf.mxu0 }
 0x1c4   : > { %v615_v47 = vadd.f32 %v614_v45, %v542_v42 }
 0x1c5   : > { %v3748_v49 = vpop.f32.mrf.mxu0 }
 0x1c6   : > { %v625_v51 = vrot.slane %v615_v47, %v4329_v38 }
 0x1c8   : > { %v4341_v53 = vadd.f32 %v625_v51, %v620_v50  ;;  %v4343_v54 = vadd.f32 %v625_v51, %v621_v52 }
 0x1ca   : > { %v628_v55 = vsel %vm544_vm2, %v4341_v53, 0.0  ;;  %v631_v56 = vsel %vm544_vm2, %v4343_v54, 0.0 }
 0x1cb   : > { %629 = vadd.xlane.f32.xlu0 %v628_v55 }
 0x1cf   : > { %632 = vadd.xlane.f32.xlu0 %v631_v56 }
 0x254   : > { %v630_v57 = vpop.xlane.xlu0 %629 }
 0x255   : > { %v635_v58 = vmul.f32 0.03125, %v630_v57 }
 0x257   : > { %v637_v59 = vsub.f32 %v4341_v53, %v635_v58 }
 0x258   : > { %v633_v60 = vpop.xlane.xlu0 %632 }
 0x259   : > { %v636_v61 = vmul.f32 0.03125, %v633_v60  ;;  %v639_v62 = vmul.f32 %v637_v59, %v637_v59 }
 0x25b   : > { %v638_v63 = vsub.f32 %v4343_v54, %v636_v61  ;;  %v641_v0 = vsel %vm544_vm2, %v639_v62, 0.0 }
 0x25c   : > { %642 = vadd.xlane.f32.xlu1 %v641_v0 }
 0x25d   : > { %v640_v1 = vmul.f32 %v638_v63, %v638_v63 }
 0x25f   : > { %v644_v2 = vsel %vm544_vm2, %v640_v1, 0.0 }
 0x260   : > { %645 = vadd.xlane.f32.xlu1 %v644_v2 }
 0x2e5   : > { %v643_v7 = vpop.xlane.xlu1 %642 }
 0x2e6   : > { %v647_v8 = vmul.f32 0.03125, %v643_v7 }
 0x2e8   : > { %v649_v9 = vadd.f32 1e-05, %v647_v8 }
 0x2e9   : > { %v646_v10 = vpop.xlane.xlu1 %645 }
 0x2ea   : > { %4035 = vrsqrt.f32 %v649_v9  ;;  %v648_v11 = vmul.f32 0.03125, %v646_v10 }
 0x2ec   : > { %v650_v12 = vadd.f32 1e-05, %v648_v11 }
 0x2ee   : > { %4037 = vrsqrt.f32 %v650_v12 }
 0x2f7   : > { %v4036_v16 = vpop.eup %4035 }
 0x2f8   : > { %v653_v17 = vmul.f32 %v4036_v16, %v637_v59 }
 0x2fa   : > { %v659_v19 = vmul.f32 %v658_v15, %v653_v17 }
 0x2fb   : > { %v4038_v20 = vpop.eup %4037 }
 0x2fc   : > { %v654_v21 = vmul.f32 %v4038_v20, %v638_v63  ;;  %v665_v22 = vadd.f32 %v664_v18, %v659_v19 }
 0x2fe   : > { %v660_v23 = vmul.f32 %v658_v15, %v654_v21  ;;  %3757 = vmatprep.mubr.msk.f32.mxu0 %vm544_vm2, %v665_v22 }
 0x300   : > { %v666_v24 = vadd.f32 %v664_v18, %v660_v23 }
 0x302   : > { %3758 = vmatmul.mubr.msk.f32.vlgmr.msra.gmra.mxu0 %vm544_vm2, %v666_v24 }
 0x3c2   : > { %v3759_v28 = vpop.f32.mrf.mxu0 }
 0x3c3   : > { %v4398_v26 = vadd.f32 %v3759_v28, %v674_v27 }
 0x3c4   : > { %v747_v29 = vpop.f32.mrf.mxu0 }
 0x3c5   : > { %v4400_v30 = vadd.f32 %v747_v29, %v674_v27  ;;  %760 = vrot.lane.b32.xlu0 %v4398_v26, %s4138_s23 }
 0x3c7   : > { %758 = vrot.lane.b32.xlu1 %v4400_v30, %s4138_s23  ;;  %3764 = vmatprep.mubr.msk.f32.mxu0 %vm762_vm3, %v4400_v30 }
 0x437   : > { %v761_v31 = vpop.permute.xlu0 %760 }
 0x438   : > { %3760 = vmatprep.subr.msk.mxu0 %vm762_vm3, %v761_v31 }
 0x439   : > { %3761 = vmatpush3.xpose.msk.msra.mxu0 %vm762_vm3, %v761_v31  ;;  %v759_v32 = vpop.permute.xlu1 %758 }
 0x43a   : > { %3762 = vmatprep.subr.msk.mxu0 %vm762_vm3, %v759_v32 }
 0x43d   : > { %3763 = vmatpush3.xpose.msk.msra.mxu0 %vm762_vm3, %v759_v32 }
 0x440   : > { %3765 = vmatmul.mubr.msk.f32.vlgmr.msra.gmra.mxu0 %vm762_vm3, %v4398_v26 }
 0x500   : > { %v3766_v33 = vpop.f32.mrf.mxu0 }
 0x501   : > { %v847_v34 = vmul.f32 0.35355338, %v3766_v33 }
 0x502   : > { %v837_v35 = vpop.f32.mrf.mxu0 }
 0x503   : > { %v846_v36 = vmul.f32 0.35355338, %v837_v35  ;;  %v851_v39 = vsel %vm361_vm1, %v847_v34, -inf }
 0x504   : > { %852 = vmax.xlane.f32.xlu0 %v851_v39 }
 0x505   : > { %v848_v40 = vsel %vm361_vm1, %v846_v36, -inf }
 0x506   : > { %849 = vmax.xlane.f32.xlu1 %v848_v40 }
 0x58d   : > { %v853_v41 = vpop.xlane.xlu0 %852 }
 0x58e   : > { %v855_v42 = vsub.f32 %v847_v34, %v853_v41 }
 0x58f   : > { %v850_v43 = vpop.xlane.xlu1 %849 }
 0x590   : > { %v858_v44 = vmul.f32 1.442695, %v855_v42  ;;  %v854_v45 = vsub.f32 %v846_v36, %v850_v43 }
 0x592   : > { %4039 = vpow2.f32 %v858_v44  ;;  %v856_v46 = vmul.f32 1.442695, %v854_v45 }
 0x594   : > { %4041 = vpow2.f32 %v856_v46 }
 0x59f   : > { %v4040_v47 = vpop.eup %4039 }
 0x5a0   : > { %v863_v48 = vsel %vm361_vm1, %v4040_v47, 0.0 }
 0x5a1   : > { %v4042_v49 = vpop.eup %4041  ;;  %864 = vadd.xlane.f32.xlu1 %v863_v48 }
 0x5a2   : > { %v860_v50 = vsel %vm361_vm1, %v4042_v49, 0.0 }
 0x5a3   : > { %861 = vadd.xlane.f32.xlu0 %v860_v50 }
 0x5b2   : > { %870 = vrot.lane.b32.xlu1 %v4400_v30, %s4139_s24 }
 0x5b6   : > { %963 = vrot.lane.b32.xlu1 %v4398_v26, %s4140_s25 }
 0x5b9   : > { %872 = vrot.lane.b32.xlu0 %v4398_v26, %s4139_s24 }
 0x5ba   : > { %961 = vrot.lane.b32.xlu1 %v4400_v30, %s4140_s25 }
 0x5bd   : > { %957 = vrot.lane.b32.xlu0 %v4400_v30, %s4141_s26 }
 0x5be   : > { %1165 = vrot.lane.b32.xlu1 %v4398_v26, %s4142_s27 }
 0x5c1   : > { %959 = vrot.lane.b32.xlu0 %v4398_v26, %s4141_s26 }
 0x5c2   : > { %1163 = vrot.lane.b32.xlu1 %v4400_v30, %s4142_s27 }
 0x5c5   : > { %1159 = vrot.lane.b32.xlu0 %v4400_v30, %s4143_s29 }
 0x5c6   : > { %1161 = vrot.lane.b32.xlu1 %v4398_v26, %s4143_s29 }
 0x62a   : > { %v865_v51 = vpop.xlane.xlu1 %864 }
 0x62b   : > { %4043 = vrcp.f32 %v865_v51 }
 0x62c   : > { %v862_v52 = vpop.xlane.xlu0 %861 }
 0x62d   : > { %4045 = vrcp.f32 %v862_v52 }
 0x62e   : > { %v871_v55 = vpop.permute.xlu1 %870 }
 0x630   : > { %v873_v56 = vpop.permute.xlu0 %872 }
 0x631   : > { %3767 = vmatprep.subr.mxu0 %v873_v56 }
 0x632   : > { %3768 = vmatpush3.msra.mxu0 %v873_v56  ;;  %v964_v57 = vpop.permute.xlu1 %963 }
 0x633   : > { %3769 = vmatprep.subr.mxu0 %v871_v55 }
 0x634   : > { %3770 = vmatpush3.msra.mxu0 %v871_v55  ;;  %v958_v60 = vpop.permute.xlu0 %957 }
 0x635   : > { %3774 = vmatprep.subr.msk.mxu0 %vm762_vm3, %v964_v57 }
 0x636   : > { %v962_v61 = vpop.permute.xlu1 %961 }
 0x638   : > { %v4044_v58 = vpop.eup %4043  ;;  %v960_v0 = vpop.permute.xlu0 %959 }
 0x639   : > { %v869_v63 = vmul.f32 %v4044_v58, %v4040_v47 }
 0x63a   : > { %v4046_v59 = vpop.eup %4045  ;;  %v1166_v1 = vpop.permute.xlu1 %1165 }
 0x63b   : > { %v868_v62 = vmul.f32 %v4046_v59, %v4042_v49 }
 0x63c   : > { %v1160_v2 = vpop.permute.xlu0 %1159 }
 0x63d   : > { %3771 = vmatprep.mubr.msk.f32.mxu0 %vm361_vm1, %v868_v62 }
 0x63e   : > { %3772 = vmatmul.mubr.msk.f32.vlgmr.msra.gmra.mxu0 %vm361_vm1, %v869_v63  ;;  %v1164_v7 = vpop.permute.xlu1 %1163 }
 0x63f   : > { %3775 = vmatpush3.xpose.msk.msra.mxu0 %vm762_vm3, %v964_v57  ;;  %3778 = vmatprep.mubr.msk.f32.mxu0 %vm762_vm3, %v958_v60 }
 0x640   : > { %3776 = vmatprep.subr.msk.mxu0 %vm762_vm3, %v962_v61 }
 0x642   : > { %v1162_v8 = vpop.permute.xlu1 %1161 }
 0x643   : > { %3777 = vmatpush3.xpose.msk.msra.mxu0 %vm762_vm3, %v962_v61 }
 0x644   : > { %3788 = vmatprep.subr.msk.mxu0 %vm762_vm3, %v1166_v1 }
 0x646   : > { %3779 = vmatmul.mubr.msk.f32.vlgmr.msra.gmra.mxu0 %vm762_vm3, %v960_v0 }
 0x647   : > { %3789 = vmatpush3.xpose.msk.msra.mxu0 %vm762_vm3, %v1166_v1  ;;  %3792 = vmatprep.mubr.msk.f32.mxu0 %vm762_vm3, %v1160_v2 }
 0x648   : > { %3790 = vmatprep.subr.msk.mxu0 %vm762_vm3, %v1164_v7 }
 0x64b   : > { %3791 = vmatpush3.xpose.msk.msra.mxu0 %vm762_vm3, %v1164_v7 }
 0x64e   : > { %3793 = vmatmul.mubr.msk.f32.vlgmr.msra.gmra.mxu0 %vm762_vm3, %v1162_v8 }
 0x6fe   : > { %v4452_v9 = vpop.f32.mrf.mxu0 }
 0x700   : > { %v4454_v10 = vpop.f32.mrf.mxu0 }
 0x706   : > { %v3780_v11 = vpop.f32.mrf.mxu0 }
 0x707   : > { %v1049_v21 = vmul.f32 0.35355338, %v3780_v11 }
 0x708   : > { %v1039_v12 = vpop.f32.mrf.mxu0 }
 0x709   : > { %v1053_v22 = vsel %vm361_vm1, %v1049_v21, -inf  ;;  %v1048_v45 = vmul.f32 0.35355338, %v1039_v12 }
 0x70b   : > { %v1050_v46 = vsel %vm361_vm1, %v1048_v45, -inf }
 0x70e   : > { %v3794_v15 = vpop.f32.mrf.mxu0 }
 0x70f   : > { %v1251_v16 = vmul.f32 0.35355338, %v3794_v15 }
 0x710   : > { %v1241_v17 = vpop.f32.mrf.mxu0 }
 0x711   : > { %v1250_v18 = vmul.f32 0.35355338, %v1241_v17  ;;  %v1255_v19 = vsel %vm361_vm1, %v1251_v16, -inf }
 0x712   : > { %1256 = vmax.xlane.f32.xlu1 %v1255_v19 }
 0x713   : > { %v1252_v20 = vsel %vm361_vm1, %v1250_v18, -inf }
 0x714   : > { %1253 = vmax.xlane.f32.xlu0 %v1252_v20 }
 0x723   : > { %1274 = vrot.lane.b32.xlu1 %v4400_v30, %s4144_s11 }
 0x727   : > { %1367 = vrot.lane.b32.xlu1 %v4398_v26, %s4145_s13 }
 0x72b   : > { %1365 = vrot.lane.b32.xlu1 %v4400_v30, %s4145_s13 }
 0x72f   : > { %1363 = vrot.lane.b32.xlu1 %v4398_v26, %s4146_s14 }
 0x753   : > { %1054 = vmax.xlane.f32.xlu1 %v1053_v22 }
 0x79b   : > { %v1257_v23 = vpop.xlane.xlu1 %1256 }
 0x79c   : > { %v1259_v24 = vsub.f32 %v1251_v16, %v1257_v23 }
 0x79d   : > { %v1254_v27 = vpop.xlane.xlu0 %1253 }
 0x79e   : > { %v1262_v28 = vmul.f32 1.442695, %v1259_v24  ;;  %v1258_v29 = vsub.f32 %v1250_v18, %v1254_v27 }
 0x79f   : > { %v1275_v36 = vpop.permute.xlu1 %1274 }
 0x7a0   : > { %4047 = vpow2.f32 %v1262_v28  ;;  %v1260_v31 = vmul.f32 1.442695, %v1258_v29 }
 0x7a2   : > { %4049 = vpow2.f32 %v1260_v31 }
 0x7a3   : > { %v1368_v39 = vpop.permute.xlu1 %1367 }
 0x7a7   : > { %v1366_v40 = vpop.permute.xlu1 %1365 }
 0x7ab   : > { %v1364_v41 = vpop.permute.xlu1 %1363 }
 0x7ad   : > { %v4048_v32 = vpop.eup %4047 }
 0x7ae   : > { %v1267_v33 = vsel %vm361_vm1, %v4048_v32, 0.0 }
 0x7af   : > { %v4050_v34 = vpop.eup %4049  ;;  %1268 = vadd.xlane.f32.xlu0 %v1267_v33 }
 0x7b0   : > { %v1264_v35 = vsel %vm361_vm1, %v4050_v34, 0.0 }
 0x7b3   : > { %1265 = vadd.xlane.f32.xlu0 %v1264_v35 }
 0x7c9   : > { %1276 = vrot.lane.b32.xlu0 %v4398_v26, %s4144_s11 }
 0x7cd   : > { %1361 = vrot.lane.b32.xlu0 %v4400_v30, %s4146_s14 }
 0x7dc   : > { %v1055_v42 = vpop.xlane.xlu1 %1054 }
 0x7dd   : > { %v1057_v43 = vsub.f32 %v1049_v21, %v1055_v42 }
 0x7df   : > { %v1060_v44 = vmul.f32 1.442695, %v1057_v43 }
 0x7e1   : > { %4051 = vpow2.f32 %v1060_v44 }
 0x7ec   : > { %1051 = vmax.xlane.f32.xlu0 %v1050_v46 }
 0x7ee   : > { %v4474_v47 = vpop.eup %4051 }
 0x7ef   : > { %v1065_v48 = vsel %vm361_vm1, %v4474_v47, 0.0 }
 0x7f0   : > { %1066 = vadd.xlane.f32.xlu1 %v1065_v48 }
 0x838   : > { %v1269_v49 = vpop.xlane.xlu0 %1268 }
 0x839   : > { %4053 = vrcp.f32 %v1269_v49 }
 0x83c   : > { %v1266_v50 = vpop.xlane.xlu0 %1265 }
 0x83d   : > { %4055 = vrcp.f32 %v1266_v50 }
 0x840   : > { %v1277_v51 = vpop.permute.xlu0 %1276 }
 0x841   : > { %3795 = vmatprep.subr.mxu0 %v1277_v51 }
 0x842   : > { %3796 = vmatpush3.msra.mxu0 %v1277_v51 }
 0x843   : > { %3797 = vmatprep.subr.mxu0 %v1275_v36 }
 0x844   : > { %3798 = vmatpush3.msra.mxu0 %v1275_v36  ;;  %v1362_v58 = vpop.permute.xlu0 %1361 }
 0x845   : > { %3802 = vmatprep.subr.msk.mxu0 %vm762_vm3, %v1368_v39 }
 0x846   : > { %v4054_v52 = vpop.eup %4053 }
 0x847   : > { %v1273_v57 = vmul.f32 %v4054_v52, %v4048_v32 }
 0x84a   : > { %v4056_v55 = vpop.eup %4055 }
 0x84b   : > { %v1272_v56 = vmul.f32 %v4056_v55, %v4050_v34 }
 0x84d   : > { %3799 = vmatprep.mubr.msk.f32.mxu0 %vm361_vm1, %v1272_v56 }
 0x84e   : > { %3800 = vmatmul.mubr.msk.f32.vlgmr.msra.gmra.mxu0 %vm361_vm1, %v1273_v57 }
 0x84f   : > { %3803 = vmatpush3.xpose.msk.msra.mxu0 %vm762_vm3, %v1368_v39  ;;  %3806 = vmatprep.mubr.msk.f32.mxu0 %vm762_vm3, %v1362_v58 }
 0x850   : > { %3804 = vmatprep.subr.msk.mxu0 %vm762_vm3, %v1366_v40 }
 0x853   : > { %3805 = vmatpush3.xpose.msk.msra.mxu0 %vm762_vm3, %v1366_v40 }
 0x856   : > { %3807 = vmatmul.mubr.msk.f32.vlgmr.msra.gmra.mxu0 %vm762_vm3, %v1364_v41 }
 0x875   : > { %v1052_v59 = vpop.xlane.xlu0 %1051 }
 0x876   : > { %v1056_v60 = vsub.f32 %v1048_v45, %v1052_v59 }
 0x878   : > { %v1058_v61 = vmul.f32 1.442695, %v1056_v60 }
 0x879   : > { %v1067_v32 = vpop.xlane.xlu1 %1066 }
 0x87a   : > { %4057 = vpow2.f32 %v1058_v61 }
 0x887   : > { %v4058_v12 = vpop.eup %4057 }
 0x888   : > { %v1062_v15 = vsel %vm361_vm1, %v4058_v12, 0.0 }
 0x90e   : > { %v4486_v62 = vpop.f32.mrf.mxu0 }
 0x910   : > { %v1352_v63 = vpop.f32.mrf.mxu0 }
 0x916   : > { %v3808_v0 = vpop.f32.mrf.mxu0 }
 0x917   : > { %v1453_v7 = vmul.f32 0.35355338, %v3808_v0 }
 0x918   : > { %v1443_v1 = vpop.f32.mrf.mxu0 }
 0x919   : > { %v1452_v2 = vmul.f32 0.35355338, %v1443_v1  ;;  %v1457_v11 = vsel %vm361_vm1, %v1453_v7, -inf }
 0x91b   : > { %v1454_v8 = vsel %vm361_vm1, %v1452_v2, -inf }
 0x91c   : > { %1455 = vmax.xlane.f32.xlu0 %v1454_v8 }
 0x920   : > { %1458 = vmax.xlane.f32.xlu0 %v1457_v11 }
 0x924   : > { %1063 = vadd.xlane.f32.xlu0 %v1062_v15 }
 0x9a5   : > { %v1456_v16 = vpop.xlane.xlu0 %1455 }
 0x9a6   : > { %v1460_v17 = vsub.f32 %v1452_v2, %v1456_v16 }
 0x9a8   : > { %v1462_v18 = vmul.f32 1.442695, %v1460_v17 }
 0x9a9   : > { %v1459_v19 = vpop.xlane.xlu0 %1458 }
 0x9aa   : > { %4059 = vpow2.f32 %v1462_v18  ;;  %v1461_v20 = vsub.f32 %v1453_v7, %v1459_v19 }
 0x9ac   : > { %v1464_v21 = vmul.f32 1.442695, %v1461_v20 }
 0x9ad   : > { %v1064_v22 = vpop.xlane.xlu0 %1063 }
 0x9ae   : > { %4061 = vpow2.f32 %v1464_v21 }
 0x9af   : > { %4063 = vrcp.f32 %v1064_v22 }
 0x9b0   : > { %4065 = vrcp.f32 %v1067_v32  ;;  %v1847_v32 = vld [vmem:[%s4941_s6 + $0x68] sm:$0xff] }
 0x9b7   : > { %v4060_v23 = vpop.eup %4059 }
 0x9b8   : > { %v1466_v24 = vsel %vm361_vm1, %v4060_v23, 0.0 }
 0x9b9   : > { %1467 = vadd.xlane.f32.xlu0 %v1466_v24  ;;  %v1737_v24 = vld [vmem:[%s4940_s5 + $0x10] sm:$0xff] }
 0x9bb   : > { %v4062_v27 = vpop.eup %4061 }
 0x9bc   : > { %v4064_v28 = vpop.eup %4063  ;;  %v1469_v29 = vsel %vm361_vm1, %v4062_v27, 0.0 }
 0x9bd   : > { %1470 = vadd.xlane.f32.xlu1 %v1469_v29  ;;  %v1070_v31 = vmul.f32 %v4064_v28, %v4058_v12  ;;  %v1735_v28 = vld [vmem:[%s4940_s5] sm:$0xff]  ;;  %v1849_v29 = vld [vmem:[%s4941_s6 + $0x78] sm:$0xff] }
 0x9bf   : > { %3785 = vmatprep.mubr.msk.f32.mxu1 %vm361_vm1, %v1070_v31  ;;  %v1848_v31 = vld [vmem:[%s4941_s6 + $0x70] sm:$0xff] }
 0x9ce   : > { %1072 = vrot.lane.b32.xlu1 %v4400_v30, %s4147_s15 }
 0x9cf   : > { %1074 = vrot.lane.b32.xlu0 %v4398_v26, %s4147_s15 }
 0x9d2   : > { %1478 = vrot.lane.b32.xlu1 %v4398_v26, %s4148_s16 }
 0x9d3   : > { %1608 = vrot.lane.b32.xlu0 %v4356_v3, %s4952_s10  ;;  %v4066_v3 = vpop.eup %4065 }
 0x9d6   : > { %1476 = vrot.lane.b32.xlu1 %v4400_v30, %s4148_s16 }
 0x9da   : > { %1606 = vrot.lane.b32.xlu1 %v4361_v4, %s4952_s10  ;;  %v1071_v4 = vmul.f32 %v4066_v3, %v4474_v47 }
 0x9de   : > { %1604 = vrot.lane.b32.xlu1 %v4368_v5, %s4952_s10 }
 0x9e2   : > { %1573 = vrot.lane.b32.xlu1 %v1352_v63, %s4950_s17 }
 0xa42   : > { %v1468_v33 = vpop.xlane.xlu0 %1467 }
 0xa43   : > { %4067 = vrcp.f32 %v1468_v33 }
 0xa46   : > { %v1471_v26 = vpop.xlane.xlu1 %1470  ;;  %v1075_v34 = vpop.permute.xlu0 %1074 }
 0xa47   : > { %4069 = vrcp.f32 %v1471_v26  ;;  %3781 = vmatprep.subr.mxu1 %v1075_v34 }
 0xa48   : > { %3782 = vmatpush3.msra.mxu1 %v1075_v34 }
 0xa4a   : > { %v1073_v30 = vpop.permute.xlu1 %1072  ;;  %v1609_v43 = vpop.permute.xlu0 %1608 }
 0xa4b   : > { %3783 = vmatprep.subr.mxu1 %v1073_v30 }
 0xa4c   : > { %3784 = vmatpush3.msra.mxu1 %v1073_v30 }
 0xa4d   : > { %3786 = vmatmul.mubr.msk.f32.vlgmr.msra.gmra.mxu1 %vm361_vm1, %v1071_v4 }
 0xa4e   : > { %v1479_v5 = vpop.permute.xlu1 %1478 }
 0xa4f   : > { %3809 = vmatprep.subr.mxu1 %v1479_v5 }
 0xa50   : > { %v4068_v35 = vpop.eup %4067  ;;  %3810 = vmatpush3.msra.mxu1 %v1479_v5  ;;  %v1725_v5 = vsub.s32 2, %v4326_v37 }
 0xa51   : > { %v1474_v36 = vmul.f32 %v4068_v35, %v4060_v23  ;;  %v1738_v23 = vld [vmem:[%s4940_s5 + $0x18] sm:$0xff]  ;;  %v4572_v35 = vsub.s32 3, %v4326_v37 }
 0xa52   : > { %v1477_v39 = vpop.permute.xlu1 %1476  ;;  %3827 = vmatprep.subr.mxu0 %v1738_v23 }
 0xa53   : > { %3811 = vmatprep.subr.mxu1 %v1477_v39  ;;  %3813 = vmatprep.mubr.msk.f32.mxu1 %vm361_vm1, %v1474_v36  ;;  %v1726_v36 = vrot.slane %v4394_v25, %v1725_v5 }
 0xa54   : > { %v4070_v40 = vpop.eup %4069  ;;  %3812 = vmatpush3.msra.mxu1 %v1477_v39  ;;  %3828 = vmatpush3.msra.mxu0 %v1738_v23 }
 0xa55   : > { %v1475_v41 = vmul.f32 %v4070_v40, %v4062_v27  ;;  %3816 = vmatprep.subr.mxu1 %v1609_v43  ;;  %v1736_v27 = vld [vmem:[%s4940_s5 + $0x8] sm:$0xff]  ;;  %3829 = vmatprep.subr.mxu0 %v1737_v24 }
 0xa56   : > { %v1607_v42 = vpop.permute.xlu1 %1606  ;;  %3830 = vmatpush3.msra.mxu0 %v1737_v24 }
 0xa57   : > { %3814 = vmatmul.mubr.msk.f32.vlgmr.msra.gmra.mxu1 %vm361_vm1, %v1475_v41  ;;  %3831 = vmatprep.subr.mxu0 %v1736_v27  ;;  %v1732_v41 = vrot.slane %v4394_v25, %v4572_v35 }
 0xa58   : > { %3817 = vmatpush3.msra.mxu1 %v1609_v43  ;;  %3832 = vmatpush3.msra.mxu0 %v1736_v27 }
 0xa59   : > { %3818 = vmatprep.subr.mxu1 %v1607_v42  ;;  %3833 = vmatprep.subr.mxu0 %v1735_v28 }
 0xa5a   : > { %v1605_v44 = vpop.permute.xlu1 %1604  ;;  %3819 = vmatpush3.msra.mxu1 %v1607_v42  ;;  %3834 = vmatpush3.msra.mxu0 %v1735_v28 }
 0xa5b   : > { %3820 = vmatprep.subr.mxu1 %v1605_v44 }
 0xa5c   : > { %3821 = vmatpush3.msra.mxu1 %v1605_v44 }
 0xa5e   : > { %v1574_v51 = vpop.permute.xlu1 %1573 }
 0xb0d   : > { %v3787_v45 = vpop.f32.mrf.mxu1 }
 0xb0f   : > { %v1150_v46 = vpop.f32.mrf.mxu1 }
 0xb10   : > { %1565 = vrot.lane.b32.xlu0 %v1150_v46, %s4948_s18 }
 0xb14   : > { %1567 = vrot.lane.b32.xlu0 %v3787_v45, %s4948_s18 }
 0xb17   : > { %v3815_v47 = vpop.f32.mrf.mxu1 }
 0xb18   : > { %1575 = vrot.lane.b32.xlu0 %v4486_v62, %s4950_s17  ;;  %v1596_v62 = vsub.s32 1, %v4326_v37  ;;  %s4958_s17 = sshll.u32 %s4960_s28, 3 }
 0xb19   : > { %v1554_v48 = vpop.f32.mrf.mxu1 }
 0xb1a   : > { %1581 = vrot.lane.b32.xlu1 %v1554_v48, %s4946_s19  ;;  %v1597_v63 = vrot.slane %v4394_v25, %v1596_v62  ;;  %v1846_v48 = vld [vmem:[%s4941_s6 + $0x60] sm:$0xff] }
 0xb1c   : > { %1602 = vrot.lane.b32.xlu0 %v4377_v6, %s4952_s10 }
 0xb1e   : > { %1583 = vrot.lane.b32.xlu1 %v3815_v47, %s4946_s19 }
 0xb82   : > { %v1566_v49 = vpop.permute.xlu0 %1565 }
 0xb83   : > { %v1587_v52 = vsel %vm762_vm3, %v4454_v10, %v1566_v49  ;;  %v1845_v49 = vld [vmem:[%s4941_s6 + $0x58] sm:$0xff] }
 0xb84   : > { %v1589_v57 = vsel %vm361_vm1, %v1587_v52, %v1574_v51  ;;  %v1843_v51 = vld [vmem:[%s4941_s6 + $0x48] sm:$0xff]  ;;  %v1842_v52 = vld [vmem:[%s4941_s6 + $0x40] sm:$0xff] }
 0xb86   : > { %v1568_v50 = vpop.permute.xlu0 %1567 }
 0xb87   : > { %v1588_v6 = vsel %vm762_vm3, %v4452_v9, %v1568_v50  ;;  %v1844_v50 = vld [vmem:[%s4941_s6 + $0x50] sm:$0xff] }
 0xb8a   : > { %v1576_v55 = vpop.permute.xlu0 %1575 }
 0xb8b   : > { %v1590_v60 = vsel %vm361_vm1, %v1588_v6, %v1576_v55  ;;  %v1841_v55 = vld [vmem:[%s4941_s6 + $0x38] sm:$0xff]  ;;  %v1836_v6 = vld [vmem:[%s4941_s6 + $0x10] sm:$0xff] }
 0xb8c   : > { %v1582_v56 = vpop.permute.xlu1 %1581 }
 0xb8d   : > { %v1592_v58 = vsel %vm1591_vm4, %v1589_v57, %v1582_v56  ;;  %v1840_v56 = vld [vmem:[%s4941_s6 + $0x30] sm:$0xff]  ;;  %v1839_v57 = vld [vmem:[%s4941_s6 + $0x28] sm:$0xff] }
 0xb8e   : > { %3824 = vmatprep.mubr.msk.f32.mxu1 %vm544_vm2, %v1592_v58  ;;  %v1603_v59 = vpop.permute.xlu0 %1602  ;;  %v1838_v58 = vld [vmem:[%s4941_s6 + $0x20] sm:$0xff] }
 0xb8f   : > { %3822 = vmatprep.subr.mxu1 %v1603_v59 }
 0xb90   : > { %v1584_v61 = vpop.permute.xlu1 %1583  ;;  %3823 = vmatpush3.msra.mxu1 %v1603_v59  ;;  %v1837_v59 = vld [vmem:[%s4941_s6 + $0x18] sm:$0xff] }
 0xb91   : > { %v1593_v10 = vsel %vm1591_vm4, %v1590_v60, %v1584_v61  ;;  %3838 = vmatprep.subr.mxu1 %v1849_v29  ;;  %v1835_v60 = vld [vmem:[%s4941_s6 + $0x8] sm:$0xff]  ;;  %v1834_v61 = vld [vmem:[%s4941_s6] sm:$0xff] }
 0xb92   : > { %3825 = vmatmul.mubr.msk.f32.vlgmr.msra.gmra.mxu1 %vm544_vm2, %v1593_v10  ;;  %v4621_v10 = vsub.s32 4, %v4326_v37 }
 0xb93   : > { %3839 = vmatpush3.msra.mxu1 %v1849_v29 }
 0xb94   : > { %3840 = vmatprep.subr.mxu1 %v1848_v31 }
 0xb95   : > { %3841 = vmatpush3.msra.mxu1 %v1848_v31 }
 0xb96   : > { %3842 = vmatprep.subr.mxu1 %v1847_v32 }
 0xb97   : > { %3843 = vmatpush3.msra.mxu1 %v1847_v32 }
 0xb98   : > { %3844 = vmatprep.subr.mxu1 %v1846_v48 }
 0xb99   : > { %3845 = vmatpush3.msra.mxu1 %v1846_v48 }
 0xb9a   : > { %3846 = vmatprep.subr.mxu1 %v1845_v49 }
 0xb9b   : > { %3847 = vmatpush3.msra.mxu1 %v1845_v49 }
 0xb9c   : > { %3848 = vmatprep.subr.mxu1 %v1844_v50 }
 0xb9d   : > { %3849 = vmatpush3.msra.mxu1 %v1844_v50 }
 0xb9e   : > { %3850 = vmatprep.subr.mxu1 %v1843_v51 }
 0xb9f   : > { %3851 = vmatpush3.msra.mxu1 %v1843_v51 }
 0xba0   : > { %3852 = vmatprep.subr.mxu1 %v1842_v52 }
 0xba1   : > { %3853 = vmatpush3.msra.mxu1 %v1842_v52  ;;  %v1960_v52 = vrot.slane %v4394_v25, %v657_v13 }
 0xba2   : > { %3854 = vmatprep.subr.mxu1 %v1841_v55 }
 0xba3   : > { %3855 = vmatpush3.msra.mxu1 %v1841_v55 }
 0xba4   : > { %3856 = vmatprep.subr.mxu1 %v1840_v56 }
 0xba5   : > { %3857 = vmatpush3.msra.mxu1 %v1840_v56 }
 0xba6   : > { %3858 = vmatprep.subr.mxu1 %v1839_v57 }
 0xba7   : > { %3859 = vmatpush3.msra.mxu1 %v1839_v57 }
 0xba8   : > { %3860 = vmatprep.subr.mxu1 %v1838_v58 }
 0xba9   : > { %3861 = vmatpush3.msra.mxu1 %v1838_v58 }
 0xbaa   : > { %3862 = vmatprep.subr.mxu1 %v1837_v59 }
 0xbab   : > { %3863 = vmatpush3.msra.mxu1 %v1837_v59  ;;  %v1966_v59 = vrot.slane %v4394_v25, %v663_v14 }
 0xbac   : > { %3864 = vmatprep.subr.mxu1 %v1836_v6 }
 0xbad   : > { %3865 = vmatpush3.msra.mxu1 %v1836_v6 }
 0xbae   : > { %3866 = vmatprep.subr.mxu1 %v1835_v60 }
 0xbaf   : > { %3867 = vmatpush3.msra.mxu1 %v1835_v60 }
 0xbb0   : > { %3868 = vmatprep.subr.mxu1 %v1834_v61 }
 0xbb1   : > { %3869 = vmatpush3.msra.mxu1 %v1834_v61 }
 0xc52   : > { %v3826_v0 = vpop.f32.mrf.mxu1 }
 0xc53   : > { %v1692_v1 = vadd.f32 %v3826_v0, %v1597_v63 }
 0xc54   : > { %v1686_v2 = vpop.f32.mrf.mxu1 }
 0xc55   : > { %v4536_v9 = vadd.f32 %v1692_v1, %v4343_v54  ;;  %v1687_v7 = vadd.f32 %v1686_v2, %v1597_v63  ;;  %v1742_v63 = vrot.slane %v4394_v25, %v4621_v10 }
 0xc57   : > { %v4539_v8 = vadd.f32 %v1687_v7, %v4341_v53  ;;  %v1700_v11 = vsel %vm544_vm2, %v4536_v9, 0.0 }
 0xc58   : > { %1701 = vadd.xlane.f32.xlu1 %v1700_v11 }
 0xc59   : > { %v1697_v12 = vsel %vm544_vm2, %v4539_v8, 0.0 }
 0xc5a   : > { %1698 = vadd.xlane.f32.xlu0 %v1697_v12 }
 0xce1   : > { %v1702_v15 = vpop.xlane.xlu1 %1701 }
 0xce2   : > { %v1704_v16 = vmul.f32 0.03125, %v1702_v15 }
 0xce3   : > { %v1699_v17 = vpop.xlane.xlu0 %1698 }
 0xce4   : > { %v1703_v18 = vmul.f32 0.03125, %v1699_v17  ;;  %v1706_v19 = vsub.f32 %v4536_v9, %v1704_v16 }
 0xce6   : > { %v1705_v54 = vsub.f32 %v4539_v8, %v1703_v18  ;;  %v1708_v21 = vmul.f32 %v1706_v19, %v1706_v19 }
 0xce8   : > { %v1707_v20 = vmul.f32 %v1705_v54, %v1705_v54  ;;  %v1712_v22 = vsel %vm544_vm2, %v1708_v21, 0.0  ;;  %v4626_v21 = vsub.s32 5, %v4326_v37  ;;  %v3520_v37 = vld [vmem:[%s4941_s6 + $0xe0] sm:$0xff] }
 0xcea   : > { %v1709_v53 = vsel %vm544_vm2, %v1707_v20, 0.0 }
 0xceb   : > { %1710 = vadd.xlane.f32.xlu0 %v1709_v53 }
 0xcef   : > { %1713 = vadd.xlane.f32.xlu0 %v1712_v22  ;;  %v1853_v22 = vrot.slane %v4394_v25, %v4626_v21 }
 0xd74   : > { %v1711_v33 = vpop.xlane.xlu0 %1710 }
 0xd75   : > { %v1715_v26 = vmul.f32 0.03125, %v1711_v33 }
 0xd77   : > { %v1717_v34 = vadd.f32 1e-05, %v1715_v26 }
 0xd78   : > { %v1714_v3 = vpop.xlane.xlu0 %1713 }
 0xd79   : > { %4071 = vrsqrt.f32 %v1717_v34  ;;  %v1716_v30 = vmul.f32 0.03125, %v1714_v3 }
 0xd7b   : > { %v1718_v4 = vadd.f32 1e-05, %v1716_v30 }
 0xd7d   : > { %4073 = vrsqrt.f32 %v1718_v4 }
 0xd86   : > { %v4072_v39 = vpop.eup %4071 }
 0xd87   : > { %v1721_v40 = vmul.f32 %v4072_v39, %v1705_v54 }
 0xd89   : > { %v1727_v42 = vmul.f32 %v1726_v36, %v1721_v40 }
 0xd8a   : > { %v4074_v43 = vpop.eup %4073 }
 0xd8b   : > { %v1722_v44 = vmul.f32 %v4074_v43, %v1706_v19  ;;  %v1733_v45 = vadd.f32 %v1732_v41, %v1727_v42  ;;  %v4652_v42 = vld [vmem:[%s4939_s4 + $0x30] sm:$0xff]  ;;  %v4659_v43 = vld [vmem:[%s4939_s4 + $0x28] sm:$0xff] }
 0xd8d   : > { %v1728_v46 = vmul.f32 %v1726_v36, %v1722_v44  ;;  %3835 = vmatprep.mubr.msk.f32.mxu0 %vm544_vm2, %v1733_v45  ;;  %v4666_v44 = vld [vmem:[%s4939_s4 + $0x20] sm:$0xff] }
 0xd8f   : > { %v1734_v47 = vadd.f32 %v1732_v41, %v1728_v46  ;;  %v4647_v41 = vld [vmem:[%s4939_s4 + $0x38] sm:$0xff] }
 0xd90   : > { %3873 = vmatprep.subr.mxu0 %v4647_v41 }
 0xd91   : > { %3836 = vmatmul.mubr.msk.f32.vlgmr.msra.gmra.mxu0 %vm544_vm2, %v1734_v47 }
 0xd92   : > { %3874 = vmatpush3.msra.mxu0 %v4647_v41 }
 0xd93   : > { %3875 = vmatprep.subr.mxu0 %v4652_v42 }
 0xd94   : > { %3876 = vmatpush3.msra.mxu0 %v4652_v42 }
 0xd95   : > { %3877 = vmatprep.subr.mxu0 %v4659_v43 }
 0xd96   : > { %3878 = vmatpush3.msra.mxu0 %v4659_v43 }
 0xd97   : > { %3879 = vmatprep.subr.mxu0 %v4666_v44 }
 0xd98   : > { %3880 = vmatpush3.msra.mxu0 %v4666_v44 }
 0xe51   : > { %v3837_v0 = vpop.f32.mrf.mxu0 }
 0xe52   : > { %v1821_v1 = vadd.f32 %v3837_v0, %v1742_v63 }
 0xe53   : > { %v1815_v2 = vpop.f32.mrf.mxu0 }
 0xe54   : > { %v1827_v7 = vmul.f32 0.70710677, %v1821_v1  ;;  %v1816_v11 = vadd.f32 %v1815_v2, %v1742_v63  ;;  %v1825_v54 = vmul.f32 0.5, %v1821_v1  ;;  %v4683_v63 = vld [vmem:[%s4943_s8 + $0x10] sm:$0xff] }
 0xe55   : > { %v1977_v13 = vrot.slane %v4683_v63, %v4329_v38 }
 0xe56   : > { %4075 = verf.f32 %v1827_v7  ;;  %v1826_v12 = vmul.f32 0.70710677, %v1816_v11  ;;  %v1824_v18 = vmul.f32 0.5, %v1816_v11 }
 0xe58   : > { %4077 = verf.f32 %v1826_v12 }
 0xe63   : > { %v4076_v15 = vpop.eup %4075 }
 0xe64   : > { %v1831_v17 = vadd.f32 1.0, %v4076_v15 }
 0xe65   : > { %v4078_v16 = vpop.eup %4077 }
 0xe66   : > { %v1830_v19 = vadd.f32 1.0, %v4078_v16  ;;  %v1833_v53 = vmul.f32 %v1831_v17, %v1825_v54 }
 0xe68   : > { %v1832_v20 = vmul.f32 %v1830_v19, %v1824_v18 }
 0xe6a   : > { %3870 = vmatprep.mubr.f32.mxu1 %v1832_v20 }
 0xe6b   : > { %3871 = vmatmul.mubr.f32.vlgmr.msra.gmra.mxu1 %v1833_v53 }
 0xf2b   : > { %v3872_v23 = vpop.f32.mrf.mxu1 }
 0xf2c   : > { %v1926_v24 = vadd.f32 %v3872_v23, %v1853_v22 }
 0xf2d   : > { %v1920_v27 = vpop.f32.mrf.mxu1 }
 0xf2e   : > { %v4631_v28 = vadd.f32 %v1926_v24, %v4536_v9  ;;  %v1921_v29 = vadd.f32 %v1920_v27, %v1853_v22 }
 0xf30   : > { %v4634_v31 = vadd.f32 %v1921_v29, %v4539_v8  ;;  %v1934_v32 = vsel %vm544_vm2, %v4631_v28, 0.0 }
 0xf31   : > { %1935 = vadd.xlane.f32.xlu1 %v1934_v32 }
 0xf32   : > { %v1931_v33 = vsel %vm544_vm2, %v4634_v31, 0.0 }
 0xf33   : > { %1932 = vadd.xlane.f32.xlu0 %v1931_v33 }
 0xfba   : > { %v1936_v26 = vpop.xlane.xlu1 %1935 }
 0xfbb   : > { %v1938_v34 = vmul.f32 0.03125, %v1936_v26 }
 0xfbc   : > { %v1933_v3 = vpop.xlane.xlu0 %1932 }
 0xfbd   : > { %v1940_v30 = vsub.f32 %v4631_v28, %v1938_v34  ;;  %v1937_v4 = vmul.f32 0.03125, %v1933_v3 }
 0xfbf   : > { %v1939_v9 = vsub.f32 %v4634_v31, %v1937_v4  ;;  %v1942_v36 = vmul.f32 %v1940_v30, %v1940_v30 }
 0xfc1   : > { %v1946_v8 = vsel %vm544_vm2, %v1942_v36, 0.0  ;;  %v1941_v39 = vmul.f32 %v1939_v9, %v1939_v9 }
 0xfc2   : > { %1947 = vadd.xlane.f32.xlu1 %v1946_v8 }
 0xfc3   : > { %v1943_v40 = vsel %vm544_vm2, %v1941_v39, 0.0 }
 0xfc4   : > { %1944 = vadd.xlane.f32.xlu0 %v1943_v40 }
0x104b   : > { %v1948_v45 = vpop.xlane.xlu1 %1947 }
0x104c   : > { %v1950_v46 = vmul.f32 0.03125, %v1948_v45 }
0x104d   : > { %v1945_v47 = vpop.xlane.xlu0 %1944 }
0x104e   : > { %v1952_v48 = vadd.f32 1e-05, %v1950_v46  ;;  %v1949_v49 = vmul.f32 0.03125, %v1945_v47 }
0x1050   : > { %4079 = vrsqrt.f32 %v1952_v48  ;;  %v1951_v50 = vadd.f32 1e-05, %v1949_v49 }
0x1052   : > { %4081 = vrsqrt.f32 %v1951_v50 }
0x105d   : > { %v4080_v51 = vpop.eup %4079 }
0x105e   : > { %v1956_v55 = vmul.f32 %v4080_v51, %v1940_v30 }
0x105f   : > { %v4082_v56 = vpop.eup %4081 }
0x1060   : > { %v1955_v57 = vmul.f32 %v4082_v56, %v1939_v9  ;;  %v1962_v58 = vmul.f32 %v1960_v52, %v1956_v55 }
0x1062   : > { %v1961_v6 = vmul.f32 %v1960_v52, %v1955_v57  ;;  %v1968_v61 = vadd.f32 %v1966_v59, %v1962_v58 }
0x1064   : > { %v1967_v60 = vadd.f32 %v1966_v59, %v1961_v6 }
0x1066   : > { %3881 = vmatprep.mubr.msk.f32.mxu0 %vm544_vm2, %v1967_v60 }
0x1067   : > { %3882 = vmatmul.mubr.msk.f32.vlgmr.msra.gmra.mxu0 %vm544_vm2, %v1968_v61 }
0x1127   : > { %v3883_v0 = vpop.f32.mrf.mxu0 }
0x1128   : > { %v4687_v1 = vadd.f32 %v3883_v0, %v1977_v13 }
0x1129   : > { %v2050_v2 = vpop.f32.mrf.mxu0 }
0x112a   : > { %v4689_v14 = vadd.f32 %v2050_v2, %v1977_v13  ;;  %2063 = vrot.lane.b32.xlu0 %v4687_v1, %s4138_s23 }
0x112c   : > { %2061 = vrot.lane.b32.xlu1 %v4689_v14, %s4138_s23  ;;  %3888 = vmatprep.mubr.msk.f32.mxu0 %vm762_vm3, %v4689_v14  ;;  %s4954_s23 = smov 32  }
0x119c   : > { %v2064_v25 = vpop.permute.xlu0 %2063 }
0x119d   : > { %3884 = vmatprep.subr.msk.mxu0 %vm762_vm3, %v2064_v25 }
0x119e   : > { %3885 = vmatpush3.xpose.msk.msra.mxu0 %vm762_vm3, %v2064_v25  ;;  %v2062_v38 = vpop.permute.xlu1 %2061 }
0x119f   : > { %3886 = vmatprep.subr.msk.mxu0 %vm762_vm3, %v2062_v38 }
0x11a2   : > { %3887 = vmatpush3.xpose.msk.msra.mxu0 %vm762_vm3, %v2062_v38 }
0x11a5   : > { %3889 = vmatmul.mubr.msk.f32.vlgmr.msra.gmra.mxu0 %vm762_vm3, %v4687_v1 }
0x1265   : > { %v3890_v7 = vpop.f32.mrf.mxu0 }
0x1266   : > { %v2149_v11 = vmul.f32 0.35355338, %v3890_v7 }
0x1267   : > { %v2139_v12 = vpop.f32.mrf.mxu0 }
0x1268   : > { %v2148_v15 = vmul.f32 0.35355338, %v2139_v12  ;;  %v2153_v16 = vsel %vm361_vm1, %v2149_v11, -inf }
0x1269   : > { %2154 = vmax.xlane.f32.xlu0 %v2153_v16 }
0x126a   : > { %v2150_v17 = vsel %vm361_vm1, %v2148_v15, -inf }
0x126b   : > { %2151 = vmax.xlane.f32.xlu1 %v2150_v17 }
0x127c   : > { %2172 = vrot.lane.b32.xlu1 %v4689_v14, %s4139_s24 }
0x127f   : > { %2174 = vrot.lane.b32.xlu0 %v4687_v1, %s4139_s24  ;;  %s4955_s24 = smov 16  }
0x1280   : > { %2265 = vrot.lane.b32.xlu1 %v4687_v1, %s4140_s25 }
0x1284   : > { %2263 = vrot.lane.b32.xlu1 %v4689_v14, %s4140_s25  ;;  %s4956_s25 = smov 8  }
0x12f2   : > { %v2155_v18 = vpop.xlane.xlu0 %2154 }
0x12f3   : > { %v2157_v19 = vsub.f32 %v2149_v11, %v2155_v18 }
0x12f4   : > { %v2152_v54 = vpop.xlane.xlu1 %2151 }
0x12f5   : > { %v2160_v20 = vmul.f32 1.442695, %v2157_v19  ;;  %v2156_v53 = vsub.f32 %v2148_v15, %v2152_v54 }
0x12f6   : > { %v2175_v22 = vpop.permute.xlu0 %2174 }
0x12f7   : > { %4083 = vpow2.f32 %v2160_v20  ;;  %v2158_v23 = vmul.f32 1.442695, %v2156_v53  ;;  %3891 = vmatprep.subr.mxu0 %v2175_v22 }
0x12f8   : > { %3892 = vmatpush3.msra.mxu0 %v2175_v22  ;;  %v2173_v24 = vpop.permute.xlu1 %2172 }
0x12f9   : > { %4085 = vpow2.f32 %v2158_v23  ;;  %3893 = vmatprep.subr.mxu0 %v2173_v24 }
0x12fa   : > { %3894 = vmatpush3.msra.mxu0 %v2173_v24 }
0x12fc   : > { %v2266_v27 = vpop.permute.xlu1 %2265 }
0x12fd   : > { %3898 = vmatprep.subr.msk.mxu0 %vm762_vm3, %v2266_v27 }
0x1300   : > { %v2264_v34 = vpop.permute.xlu1 %2263 }
0x1304   : > { %v4084_v29 = vpop.eup %4083 }
0x1305   : > { %v2165_v32 = vsel %vm361_vm1, %v4084_v29, 0.0 }
0x1306   : > { %v4086_v33 = vpop.eup %4085  ;;  %2166 = vadd.xlane.f32.xlu1 %v2165_v32 }
0x1307   : > { %v2162_v26 = vsel %vm361_vm1, %v4086_v33, 0.0 }
0x1308   : > { %2163 = vadd.xlane.f32.xlu0 %v2162_v26 }
0x1317   : > { %2259 = vrot.lane.b32.xlu1 %v4689_v14, %s4141_s26 }
0x131b   : > { %2465 = vrot.lane.b32.xlu1 %v4689_v14, %s4142_s27 }
0x131e   : > { %2467 = vrot.lane.b32.xlu0 %v4687_v1, %s4142_s27 }
0x131f   : > { %2463 = vrot.lane.b32.xlu1 %v4687_v1, %s4143_s29 }
0x1322   : > { %2261 = vrot.lane.b32.xlu0 %v4687_v1, %s4141_s26  ;;  %s4957_s26 = smov 24  }
0x1326   : > { %2461 = vrot.lane.b32.xlu0 %v4689_v14, %s4143_s29 }
0x138f   : > { %v2167_v3 = vpop.xlane.xlu1 %2166 }
0x1390   : > { %4087 = vrcp.f32 %v2167_v3 }
0x1391   : > { %v2164_v30 = vpop.xlane.xlu0 %2163 }
0x1392   : > { %4089 = vrcp.f32 %v2164_v30 }
0x1393   : > { %v2260_v4 = vpop.permute.xlu1 %2259 }
0x1395   : > { %v2468_v9 = vpop.permute.xlu0 %2467 }
0x1396   : > { %3912 = vmatprep.subr.msk.mxu1 %vm762_vm3, %v2468_v9 }
0x1397   : > { %3913 = vmatpush3.xpose.msk.msra.mxu1 %vm762_vm3, %v2468_v9  ;;  %v2466_v36 = vpop.permute.xlu1 %2465 }
0x1398   : > { %3914 = vmatprep.subr.msk.mxu1 %vm762_vm3, %v2466_v36 }
0x1399   : > { %v2262_v8 = vpop.permute.xlu0 %2261 }
0x139b   : > { %3915 = vmatpush3.xpose.msk.msra.mxu1 %vm762_vm3, %v2466_v36  ;;  %v2464_v45 = vpop.permute.xlu1 %2463 }
0x139d   : > { %v2462_v39 = vpop.permute.xlu0 %2461  ;;  %v4088_v40 = vpop.eup %4087 }
0x139e   : > { %3916 = vmatprep.mubr.msk.f32.mxu1 %vm762_vm3, %v2462_v39  ;;  %v2171_v48 = vmul.f32 %v4088_v40, %v4084_v29 }
0x139f   : > { %v4090_v46 = vpop.eup %4089  ;;  %3917 = vmatmul.mubr.msk.f32.vlgmr.msra.gmra.mxu1 %vm762_vm3, %v2464_v45 }
0x13a0   : > { %v2170_v47 = vmul.f32 %v4090_v46, %v4086_v33 }
0x13a2   : > { %3895 = vmatprep.mubr.msk.f32.mxu0 %vm361_vm1, %v2170_v47 }
0x13a3   : > { %3896 = vmatmul.mubr.msk.f32.vlgmr.msra.gmra.mxu0 %vm361_vm1, %v2171_v48 }
0x13a4   : > { %3899 = vmatpush3.xpose.msk.msra.mxu0 %vm762_vm3, %v2266_v27  ;;  %3902 = vmatprep.mubr.msk.f32.mxu0 %vm762_vm3, %v2260_v4 }
0x13a5   : > { %3900 = vmatprep.subr.msk.mxu0 %vm762_vm3, %v2264_v34 }
0x13a8   : > { %3901 = vmatpush3.xpose.msk.msra.mxu0 %vm762_vm3, %v2264_v34 }
0x13ab   : > { %3903 = vmatmul.mubr.msk.f32.vlgmr.msra.gmra.mxu0 %vm762_vm3, %v2262_v8 }
0x145f   : > { %v3918_v50 = vpop.f32.mrf.mxu1 }
0x1460   : > { %v2553_v61 = vmul.f32 0.35355338, %v3918_v50 }
0x1461   : > { %v2543_v56 = vpop.f32.mrf.mxu1 }
0x1462   : > { %v2552_v6 = vmul.f32 0.35355338, %v2543_v56  ;;  %v2557_v0 = vsel %vm361_vm1, %v2553_v61, -inf }
0x1463   : > { %v4741_v49 = vpop.f32.mrf.mxu0 }
0x1464   : > { %v2554_v13 = vsel %vm361_vm1, %v2552_v6, -inf }
0x1465   : > { %v4743_v51 = vpop.f32.mrf.mxu0 }
0x146b   : > { %v3904_v52 = vpop.f32.mrf.mxu0 }
0x146c   : > { %v2351_v55 = vmul.f32 0.35355338, %v3904_v52 }
0x146d   : > { %v2341_v57 = vpop.f32.mrf.mxu0 }
0x146e   : > { %v2350_v58 = vmul.f32 0.35355338, %v2341_v57  ;;  %v2355_v59 = vsel %vm361_vm1, %v2351_v55, -inf }
0x146f   : > { %2356 = vmax.xlane.f32.xlu1 %v2355_v59 }
0x1470   : > { %v2352_v60 = vsel %vm361_vm1, %v2350_v58, -inf }
0x1471   : > { %2353 = vmax.xlane.f32.xlu0 %v2352_v60 }
0x1475   : > { %2555 = vmax.xlane.f32.xlu0 %v2554_v13 }
0x1479   : > { %2558 = vmax.xlane.f32.xlu0 %v2557_v0 }
0x14f8   : > { %v2357_v38 = vpop.xlane.xlu1 %2356 }
0x14f9   : > { %v2359_v12 = vsub.f32 %v2351_v55, %v2357_v38 }
0x14fa   : > { %v2354_v2 = vpop.xlane.xlu0 %2353 }
0x14fb   : > { %v2358_v25 = vsub.f32 %v2350_v58, %v2354_v2  ;;  %v2362_v19 = vmul.f32 1.442695, %v2359_v12 }
0x14fd   : > { %v2360_v15 = vmul.f32 1.442695, %v2358_v25 }
0x14fe   : > { %v2556_v7 = vpop.xlane.xlu0 %2555 }
0x14ff   : > { %v2560_v11 = vsub.f32 %v2552_v6, %v2556_v7 }
0x1501   : > { %v2562_v16 = vmul.f32 1.442695, %v2560_v11 }
0x1502   : > { %v2559_v17 = vpop.xlane.xlu0 %2558 }
0x1503   : > { %4091 = vpow2.f32 %v2562_v16  ;;  %v2561_v18 = vsub.f32 %v2553_v61, %v2559_v17 }
0x1504   : > { %4093 = vpow2.f32 %v2360_v15 }
0x1505   : > { %v2564_v54 = vmul.f32 1.442695, %v2561_v18 }
0x1507   : > { %4095 = vpow2.f32 %v2564_v54 }
0x1508   : > { %4097 = vpow2.f32 %v2362_v19 }
0x1510   : > { %v4092_v20 = vpop.eup %4091 }
0x1511   : > { %v2566_v53 = vsel %vm361_vm1, %v4092_v20, 0.0  ;;  %v4094_v22 = vpop.eup %4093 }
0x1512   : > { %2567 = vadd.xlane.f32.xlu0 %v2566_v53  ;;  %v2364_v24 = vsel %vm361_vm1, %v4094_v22, 0.0 }
0x1514   : > { %v4096_v23 = vpop.eup %4095 }
0x1515   : > { %v2569_v27 = vsel %vm361_vm1, %v4096_v23, 0.0  ;;  %v4098_v29 = vpop.eup %4097 }
0x1516   : > { %2365 = vadd.xlane.f32.xlu0 %v2364_v24  ;;  %2570 = vadd.xlane.f32.xlu1 %v2569_v27  ;;  %v2367_v32 = vsel %vm361_vm1, %v4098_v29, 0.0 }
0x151a   : > { %2368 = vadd.xlane.f32.xlu1 %v2367_v32 }
0x152b   : > { %2374 = vrot.lane.b32.xlu1 %v4689_v14, %s4147_s15 }
0x152c   : > { %2376 = vrot.lane.b32.xlu0 %v4687_v1, %s4147_s15 }
0x152f   : > { %2578 = vrot.lane.b32.xlu1 %v4687_v1, %s4144_s11 }
0x1530   : > { %2669 = vrot.lane.b32.xlu0 %v4687_v1, %s4145_s13 }
0x1533   : > { %2576 = vrot.lane.b32.xlu1 %v4689_v14, %s4144_s11 }
0x1534   : > { %2663 = vrot.lane.b32.xlu0 %v4689_v14, %s4146_s14 }
0x1537   : > { %2667 = vrot.lane.b32.xlu1 %v4689_v14, %s4145_s13 }
0x153b   : > { %2665 = vrot.lane.b32.xlu1 %v4687_v1, %s4146_s14 }
0x159b   : > { %v2568_v33 = vpop.xlane.xlu0 %2567 }
0x159f   : > { %v2366_v26 = vpop.xlane.xlu0 %2365  ;;  %v2571_v34 = vpop.xlane.xlu1 %2570 }
0x15a0   : > { %4099 = vrcp.f32 %v2366_v26 }
0x15a1   : > { %4101 = vrcp.f32 %v2568_v33 }
0x15a3   : > { %v2377_v3 = vpop.permute.xlu0 %2376  ;;  %v2369_v30 = vpop.xlane.xlu1 %2368 }
0x15a4   : > { %4103 = vrcp.f32 %v2369_v30  ;;  %3905 = vmatprep.subr.mxu0 %v2377_v3 }
0x15a5   : > { %3906 = vmatpush3.msra.mxu0 %v2377_v3  ;;  %4105 = vrcp.f32 %v2571_v34 }
0x15a7   : > { %v2375_v4 = vpop.permute.xlu1 %2374  ;;  %v2670_v45 = vpop.permute.xlu0 %2669 }
0x15a8   : > { %3907 = vmatprep.subr.mxu0 %v2375_v4 }
0x15a9   : > { %3908 = vmatpush3.msra.mxu0 %v2375_v4 }
0x15ab   : > { %v2579_v9 = vpop.permute.xlu1 %2578  ;;  %v2664_v55 = vpop.permute.xlu0 %2663 }
0x15ac   : > { %3919 = vmatprep.subr.mxu0 %v2579_v9 }
0x15ad   : > { %v4100_v36 = vpop.eup %4099 }
0x15ae   : > { %v2372_v8 = vmul.f32 %v4100_v36, %v4094_v22  ;;  %v4102_v39 = vpop.eup %4101 }
0x15af   : > { %v2577_v48 = vpop.permute.xlu1 %2576  ;;  %v2574_v50 = vmul.f32 %v4102_v39, %v4092_v20 }
0x15b0   : > { %3909 = vmatprep.mubr.msk.f32.mxu0 %vm361_vm1, %v2372_v8 }
0x15b1   : > { %v4104_v40 = vpop.eup %4103 }
0x15b2   : > { %v2373_v46 = vmul.f32 %v4104_v40, %v4098_v29  ;;  %v4106_v47 = vpop.eup %4105 }
0x15b3   : > { %v2575_v52 = vmul.f32 %v4106_v47, %v4096_v23  ;;  %v2668_v56 = vpop.permute.xlu1 %2667 }
0x15b4   : > { %3910 = vmatmul.mubr.msk.f32.vlgmr.msra.gmra.mxu0 %vm361_vm1, %v2373_v46 }
0x15b5   : > { %3920 = vmatpush3.msra.mxu0 %v2579_v9  ;;  %3923 = vmatprep.mubr.msk.f32.mxu0 %vm361_vm1, %v2574_v50 }
0x15b6   : > { %3921 = vmatprep.subr.mxu0 %v2577_v48 }
0x15b7   : > { %3922 = vmatpush3.msra.mxu0 %v2577_v48  ;;  %v2666_v57 = vpop.permute.xlu1 %2665 }
0x15b8   : > { %3926 = vmatprep.subr.msk.mxu0 %vm762_vm3, %v2670_v45  ;;  %3924 = vmatmul.mubr.msk.f32.vlgmr.msra.gmra.mxu0 %vm361_vm1, %v2575_v52 }
0x15b9   : > { %3927 = vmatpush3.xpose.msk.msra.mxu0 %vm762_vm3, %v2670_v45  ;;  %3930 = vmatprep.mubr.msk.f32.mxu0 %vm762_vm3, %v2664_v55 }
0x15ba   : > { %3928 = vmatprep.subr.msk.mxu0 %vm762_vm3, %v2668_v56 }
0x15bd   : > { %3929 = vmatpush3.xpose.msk.msra.mxu0 %vm762_vm3, %v2668_v56 }
0x15c0   : > { %3931 = vmatmul.mubr.msk.f32.vlgmr.msra.gmra.mxu0 %vm762_vm3, %v2666_v57 }
0x1674   : > { %v3911_v58 = vpop.f32.mrf.mxu0 }
0x1676   : > { %v2452_v59 = vpop.f32.mrf.mxu0 }
0x1678   : > { %v3925_v6 = vpop.f32.mrf.mxu0 }
0x167a   : > { %v2654_v60 = vpop.f32.mrf.mxu0 }
0x1680   : > { %v3932_v61 = vpop.f32.mrf.mxu0 }
0x1681   : > { %v2755_v13 = vmul.f32 0.35355338, %v3932_v61 }
0x1682   : > { %v2745_v0 = vpop.f32.mrf.mxu0 }
0x1683   : > { %v2754_v2 = vmul.f32 0.35355338, %v2745_v0  ;;  %v2759_v25 = vsel %vm361_vm1, %v2755_v13, -inf }
0x1684   : > { %2760 = vmax.xlane.f32.xlu1 %v2759_v25  ;;  %v3504_v25 = vld [vmem:[%s4940_s5 + $0x30] sm:$0xff] }
0x1685   : > { %v2756_v38 = vsel %vm361_vm1, %v2754_v2, -inf }
0x1686   : > { %2757 = vmax.xlane.f32.xlu0 %v2756_v38  ;;  %v3503_v38 = vld [vmem:[%s4940_s5 + $0x28] sm:$0xff] }
0x1695   : > { %2778 = vrot.lane.b32.xlu1 %v4689_v14, %s4148_s16 }
0x1699   : > { %2909 = vrot.lane.b32.xlu1 %v4647_v41, %s4954_s23 }
0x169d   : > { %2907 = vrot.lane.b32.xlu1 %v4652_v42, %s4954_s23 }
0x16a1   : > { %2905 = vrot.lane.b32.xlu1 %v4659_v43, %s4954_s23 }
0x16a5   : > { %2875 = vrot.lane.b32.xlu1 %v2654_v60, %s4955_s24 }
0x170d   : > { %v2761_v7 = vpop.xlane.xlu1 %2760 }
0x170e   : > { %v2763_v11 = vsub.f32 %v2755_v13, %v2761_v7  ;;  %v3502_v7 = vld [vmem:[%s4940_s5 + $0x20] sm:$0xff] }
0x170f   : > { %v2758_v12 = vpop.xlane.xlu0 %2757 }
0x1710   : > { %v2766_v15 = vmul.f32 1.442695, %v2763_v11  ;;  %v2762_v16 = vsub.f32 %v2754_v2, %v2758_v12  ;;  %v3505_v2 = vld [vmem:[%s4940_s5 + $0x38] sm:$0xff]  ;;  %v3522_v12 = vld [vmem:[%s4941_s6 + $0xf0] sm:$0xff] }
0x1711   : > { %v2779_v54 = vpop.permute.xlu1 %2778  ;;  %3951 = vmatprep.subr.mxu0 %v3505_v2  ;;  %v3523_v11 = vld [vmem:[%s4941_s6 + $0xf8] sm:$0xff] }
0x1712   : > { %4107 = vpow2.f32 %v2766_v15  ;;  %v2764_v17 = vmul.f32 1.442695, %v2762_v16  ;;  %3952 = vmatpush3.msra.mxu0 %v3505_v2  ;;  %v3521_v15 = vld [vmem:[%s4941_s6 + $0xe8] sm:$0xff] }
0x1713   : > { %3953 = vmatprep.subr.mxu0 %v3504_v25 }
0x1714   : > { %4109 = vpow2.f32 %v2764_v17  ;;  %3954 = vmatpush3.msra.mxu0 %v3504_v25 }
0x1715   : > { %v2910_v53 = vpop.permute.xlu1 %2909  ;;  %3955 = vmatprep.subr.mxu0 %v3503_v38 }
0x1716   : > { %3956 = vmatpush3.msra.mxu0 %v3503_v38 }
0x1717   : > { %3957 = vmatprep.subr.mxu0 %v3502_v7 }
0x1718   : > { %3958 = vmatpush3.msra.mxu0 %v3502_v7 }
0x1719   : > { %v2908_v23 = vpop.permute.xlu1 %2907 }
0x171f   : > { %v4108_v14 = vpop.eup %4107 }
0x1720   : > { %v2771_v18 = vsel %vm361_vm1, %v4108_v14, 0.0 }
0x1721   : > { %v4110_v41 = vpop.eup %4109  ;;  %2772 = vadd.xlane.f32.xlu0 %v2771_v18 }
0x1722   : > { %v2768_v42 = vsel %vm361_vm1, %v4110_v41, 0.0 }
0x1725   : > { %2769 = vadd.xlane.f32.xlu0 %v2768_v42 }
0x173b   : > { %2780 = vrot.lane.b32.xlu0 %v4687_v1, %s4148_s16 }
0x173f   : > { %2867 = vrot.lane.b32.xlu0 %v2452_v59, %s4956_s25 }
0x1743   : > { %2869 = vrot.lane.b32.xlu0 %v3911_v58, %s4956_s25 }
0x1747   : > { %2877 = vrot.lane.b32.xlu0 %v3925_v6, %s4955_s24 }
0x174b   : > { %2903 = vrot.lane.b32.xlu0 %v4666_v44, %s4954_s23  ;;  %v2906_v44 = vpop.permute.xlu1 %2905  ;;  %s348_s23 = scalar_lea.vmem %s4944_s9, %s4958_s17 }
0x174f   : > { %v2876_v30 = vpop.permute.xlu1 %2875 }
0x17aa   : > { %v2773_v43 = vpop.xlane.xlu0 %2772 }
0x17ab   : > { %4111 = vrcp.f32 %v2773_v43  ;;  %v3027_v43 = vrot.slane %v4683_v63, %v1725_v5  ;;  %v3519_v5 = vld [vmem:[%s4941_s6 + $0xd8] sm:$0xff] }
0x17ae   : > { %v2770_v19 = vpop.xlane.xlu0 %2769 }
0x17af   : > { %4113 = vrcp.f32 %v2770_v19 }
0x17b2   : > { %v2781_v20 = vpop.permute.xlu0 %2780 }
0x17b3   : > { %3933 = vmatprep.subr.mxu1 %v2781_v20 }
0x17b4   : > { %3934 = vmatpush3.msra.mxu1 %v2781_v20  ;;  %v3033_v20 = vrot.slane %v4683_v63, %v4572_v35 }
0x17b5   : > { %3935 = vmatprep.subr.mxu1 %v2779_v54 }
0x17b6   : > { %3936 = vmatpush3.msra.mxu1 %v2779_v54  ;;  %v2868_v29 = vpop.permute.xlu0 %2867 }
0x17b7   : > { %3940 = vmatprep.subr.mxu1 %v2910_v53  ;;  %v2889_v4 = vsel %vm762_vm3, %v4743_v51, %v2868_v29  ;;  %v2898_v51 = vrot.slane %v4683_v63, %v1596_v62  ;;  %v3517_v29 = vld [vmem:[%s4941_s6 + $0xc8] sm:$0xff] }
0x17b8   : > { %v4112_v1 = vpop.eup %4111  ;;  %v2891_v36 = vsel %vm361_vm1, %v2889_v4, %v2876_v30  ;;  %v3511_v30 = vld [vmem:[%s4941_s6 + $0x98] sm:$0xff]  ;;  %v3510_v4 = vld [vmem:[%s4941_s6 + $0x90] sm:$0xff] }
0x17b9   : > { %v2777_v27 = vmul.f32 %v4112_v1, %v4108_v14 }
0x17ba   : > { %v2870_v32 = vpop.permute.xlu0 %2869 }
0x17bb   : > { %v2890_v39 = vsel %vm762_vm3, %v4741_v49, %v2870_v32  ;;  %v3516_v32 = vld [vmem:[%s4941_s6 + $0xc0] sm:$0xff] }
0x17bc   : > { %v4114_v22 = vpop.eup %4113 }
0x17bd   : > { %v2776_v24 = vmul.f32 %v4114_v22, %v4110_v41 }
0x17be   : > { %v2878_v33 = vpop.permute.xlu0 %2877 }
0x17bf   : > { %3937 = vmatprep.mubr.msk.f32.mxu1 %vm361_vm1, %v2776_v24  ;;  %v2892_v40 = vsel %vm361_vm1, %v2890_v39, %v2878_v33  ;;  %v3515_v33 = vld [vmem:[%s4941_s6 + $0xb8] sm:$0xff] }
0x17c0   : > { %3938 = vmatmul.mubr.msk.f32.vlgmr.msra.gmra.mxu1 %vm361_vm1, %v2777_v27 }
0x17c1   : > { %3941 = vmatpush3.msra.mxu1 %v2910_v53 }
0x17c2   : > { %3942 = vmatprep.subr.mxu1 %v2908_v23  ;;  %v2904_v26 = vpop.permute.xlu0 %2903 }
0x17c3   : > { %3943 = vmatpush3.msra.mxu1 %v2908_v23 }
0x17c4   : > { %3944 = vmatprep.subr.mxu1 %v2906_v44 }
0x17c5   : > { %3945 = vmatpush3.msra.mxu1 %v2906_v44  ;;  %v3518_v44 = vld [vmem:[%s4941_s6 + $0xd0] sm:$0xff] }
0x17c6   : > { %3946 = vmatprep.subr.mxu1 %v2904_v26 }
0x17c7   : > { %3947 = vmatpush3.msra.mxu1 %v2904_v26  ;;  %v3514_v26 = vld [vmem:[%s4941_s6 + $0xb0] sm:$0xff] }
0x17c8   : > { %3962 = vmatprep.subr.mxu1 %v3523_v11 }
0x1880   : > { %v3939_v34 = vpop.f32.mrf.mxu1 }
0x1882   : > { %v2856_v3 = vpop.f32.mrf.mxu1 }
0x1883   : > { %2883 = vrot.lane.b32.xlu1 %v2856_v3, %s4957_s26  ;;  %v3512_v3 = vld [vmem:[%s4941_s6 + $0xa0] sm:$0xff] }
0x1887   : > { %2885 = vrot.lane.b32.xlu1 %v3939_v34, %s4957_s26  ;;  %v3513_v34 = vld [vmem:[%s4941_s6 + $0xa8] sm:$0xff] }
0x18f5   : > { %v2884_v9 = vpop.permute.xlu1 %2883 }
0x18f6   : > { %v2893_v8 = vsel %vm1591_vm4, %v2891_v36, %v2884_v9  ;;  %v3509_v9 = vld [vmem:[%s4941_s6 + $0x88] sm:$0xff]  ;;  %v3508_v36 = vld [vmem:[%s4941_s6 + $0x80] sm:$0xff] }
0x18f7   : > { %3948 = vmatprep.mubr.msk.f32.mxu1 %vm544_vm2, %v2893_v8  ;;  %v3044_v8 = vrot.slane %v4683_v63, %v4621_v10 }
0x18f9   : > { %v2886_v45 = vpop.permute.xlu1 %2885 }
0x18fa   : > { %v2894_v46 = vsel %vm1591_vm4, %v2892_v40, %v2886_v45 }
0x18fb   : > { %3949 = vmatmul.mubr.msk.f32.vlgmr.msra.gmra.mxu1 %vm544_vm2, %v2894_v46 }
0x18fc   : > { %3963 = vmatpush3.msra.mxu1 %v3523_v11 }
0x18fd   : > { %3964 = vmatprep.subr.mxu1 %v3522_v12 }
0x18fe   : > { %3965 = vmatpush3.msra.mxu1 %v3522_v12 }
0x18ff   : > { %3966 = vmatprep.subr.mxu1 %v3521_v15 }
0x1900   : > { %3967 = vmatpush3.msra.mxu1 %v3521_v15 }
0x1901   : > { %3968 = vmatprep.subr.mxu1 %v3520_v37 }
0x1902   : > { %3969 = vmatpush3.msra.mxu1 %v3520_v37 }
0x1903   : > { %3970 = vmatprep.subr.mxu1 %v3519_v5 }
0x1904   : > { %3971 = vmatpush3.msra.mxu1 %v3519_v5 }
0x1905   : > { %3972 = vmatprep.subr.mxu1 %v3518_v44 }
0x1906   : > { %3973 = vmatpush3.msra.mxu1 %v3518_v44 }
0x1907   : > { %3974 = vmatprep.subr.mxu1 %v3517_v29 }
0x1908   : > { %3975 = vmatpush3.msra.mxu1 %v3517_v29 }
0x1909   : > { %3976 = vmatprep.subr.mxu1 %v3516_v32 }
0x190a   : > { %3977 = vmatpush3.msra.mxu1 %v3516_v32 }
0x190b   : > { %3978 = vmatprep.subr.mxu1 %v3515_v33 }
0x190c   : > { %3979 = vmatpush3.msra.mxu1 %v3515_v33 }
0x190d   : > { %3980 = vmatprep.subr.mxu1 %v3514_v26 }
0x190e   : > { %3981 = vmatpush3.msra.mxu1 %v3514_v26 }
0x190f   : > { %3982 = vmatprep.subr.mxu1 %v3513_v34 }
0x1910   : > { %3983 = vmatpush3.msra.mxu1 %v3513_v34 }
0x1911   : > { %3984 = vmatprep.subr.mxu1 %v3512_v3 }
0x1912   : > { %3985 = vmatpush3.msra.mxu1 %v3512_v3 }
0x1913   : > { %3986 = vmatprep.subr.mxu1 %v3511_v30 }
0x1914   : > { %3987 = vmatpush3.msra.mxu1 %v3511_v30 }
0x1915   : > { %3988 = vmatprep.subr.mxu1 %v3510_v4 }
0x1916   : > { %3989 = vmatpush3.msra.mxu1 %v3510_v4 }
0x1917   : > { %3990 = vmatprep.subr.mxu1 %v3509_v9 }
0x1918   : > { %3991 = vmatpush3.msra.mxu1 %v3509_v9 }
0x1919   : > { %3992 = vmatprep.subr.mxu1 %v3508_v36 }
0x191a   : > { %3993 = vmatpush3.msra.mxu1 %v3508_v36 }
0x19bb   : > { %v3950_v47 = vpop.f32.mrf.mxu1 }
0x19bc   : > { %v2993_v48 = vadd.f32 %v3950_v47, %v2898_v51 }
0x19bd   : > { %v2987_v50 = vpop.f32.mrf.mxu1 }
0x19be   : > { %v4817_v52 = vadd.f32 %v2993_v48, %v4631_v28  ;;  %v2988_v55 = vadd.f32 %v2987_v50, %v2898_v51 }
0x19c0   : > { %v4820_v49 = vadd.f32 %v2988_v55, %v4634_v31  ;;  %v3001_v56 = vsel %vm544_vm2, %v4817_v52, 0.0 }
0x19c1   : > { %3002 = vadd.xlane.f32.xlu1 %v3001_v56 }
0x19c2   : > { %v2998_v57 = vsel %vm544_vm2, %v4820_v49, 0.0 }
0x19c3   : > { %2999 = vadd.xlane.f32.xlu0 %v2998_v57 }
0x1a4a   : > { %v3003_v58 = vpop.xlane.xlu1 %3002 }
0x1a4b   : > { %v3005_v62 = vmul.f32 0.03125, %v3003_v58 }
0x1a4c   : > { %v3000_v59 = vpop.xlane.xlu0 %2999 }
0x1a4d   : > { %v3004_v6 = vmul.f32 0.03125, %v3000_v59  ;;  %v3007_v60 = vsub.f32 %v4817_v52, %v3005_v62 }
0x1a4f   : > { %v3006_v28 = vsub.f32 %v4820_v49, %v3004_v6  ;;  %v3009_v13 = vmul.f32 %v3007_v60, %v3007_v60  ;;  %v3156_v6 = vrot.slane %v4683_v63, %v4626_v21 }
0x1a51   : > { %v3008_v61 = vmul.f32 %v3006_v28, %v3006_v28  ;;  %v3013_v0 = vsel %vm544_vm2, %v3009_v13, 0.0 }
0x1a53   : > { %v3010_v31 = vsel %vm544_vm2, %v3008_v61, 0.0 }
0x1a54   : > { %3011 = vadd.xlane.f32.xlu0 %v3010_v31 }
0x1a58   : > { %3014 = vadd.xlane.f32.xlu0 %v3013_v0 }
0x1add   : > { %v3012_v16 = vpop.xlane.xlu0 %3011 }
0x1ade   : > { %v3016_v17 = vmul.f32 0.03125, %v3012_v16 }
0x1ae0   : > { %v3018_v14 = vadd.f32 1e-05, %v3016_v17 }
0x1ae1   : > { %v3015_v18 = vpop.xlane.xlu0 %3014 }
0x1ae2   : > { %4115 = vrsqrt.f32 %v3018_v14  ;;  %v3017_v41 = vmul.f32 0.03125, %v3015_v18  ;;  %v3274_v18 = vld [vmem:[%s4942_s7 + $0x10] sm:$0xff] }
0x1ae4   : > { %v3019_v42 = vadd.f32 1e-05, %v3017_v41  ;;  %v3273_v41 = vld [vmem:[%s4942_s7 + $0x8] sm:$0xff] }
0x1ae6   : > { %4117 = vrsqrt.f32 %v3019_v42  ;;  %v3272_v42 = vld [vmem:[%s4942_s7] sm:$0xff] }
0x1aef   : > { %v4116_v19 = vpop.eup %4115 }
0x1af0   : > { %v3022_v54 = vmul.f32 %v4116_v19, %v3006_v28 }
0x1af2   : > { %v3028_v53 = vmul.f32 %v3027_v43, %v3022_v54 }
0x1af3   : > { %v4118_v1 = vpop.eup %4117 }
0x1af4   : > { %v3023_v22 = vmul.f32 %v4118_v1, %v3007_v60  ;;  %v3034_v23 = vadd.f32 %v3033_v20, %v3028_v53 }
0x1af6   : > { %v3029_v24 = vmul.f32 %v3027_v43, %v3023_v22  ;;  %3959 = vmatprep.mubr.msk.f32.mxu0 %vm544_vm2, %v3034_v23  ;;  %v4127_v23 = vld [vmem:[%s4943_s8] sm:$0xff] }
0x1af7   : > { %v3269_v29 = vrot.slane %v4127_v23, %v4621_v10  ;;  %v3279_v34 = vrot.slane %v4127_v23, %v4626_v21 }
0x1af8   : > { %v3035_v27 = vadd.f32 %v3033_v20, %v3029_v24  ;;  %v3263_v24 = vrot.slane %v4127_v23, %v4572_v35 }
0x1afa   : > { %3960 = vmatmul.mubr.msk.f32.vlgmr.msra.gmra.mxu0 %vm544_vm2, %v3035_v27 }
0x1bba   : > { %v3961_v39 = vpop.f32.mrf.mxu0 }
0x1bbb   : > { %v3123_v40 = vadd.f32 %v3961_v39, %v3044_v8 }
0x1bbc   : > { %v3117_v45 = vpop.f32.mrf.mxu0 }
0x1bbd   : > { %v3129_v46 = vmul.f32 0.70710677, %v3123_v40  ;;  %v3118_v51 = vadd.f32 %v3117_v45, %v3044_v8  ;;  %v3127_v58 = vmul.f32 0.5, %v3123_v40 }
0x1bbf   : > { %4119 = verf.f32 %v3129_v46  ;;  %v3128_v47 = vmul.f32 0.70710677, %v3118_v51  ;;  %v3126_v56 = vmul.f32 0.5, %v3118_v51 }
0x1bc1   : > { %4121 = verf.f32 %v3128_v47 }
0x1bcc   : > { %v4120_v48 = vpop.eup %4119 }
0x1bcd   : > { %v3133_v55 = vadd.f32 1.0, %v4120_v48 }
0x1bce   : > { %v4122_v50 = vpop.eup %4121 }
0x1bcf   : > { %v3132_v57 = vadd.f32 1.0, %v4122_v50  ;;  %v3135_v59 = vmul.f32 %v3133_v55, %v3127_v58 }
0x1bd1   : > { %v3134_v62 = vmul.f32 %v3132_v57, %v3126_v56 }
0x1bd3   : > { %3994 = vmatprep.mubr.f32.mxu1 %v3134_v62 }
0x1bd4   : > { %3995 = vmatmul.mubr.f32.vlgmr.msra.gmra.mxu1 %v3135_v59 }
0x1c94   : > { %v3996_v60 = vpop.f32.mrf.mxu1 }
0x1c95   : > { %v3229_v28 = vadd.f32 %v3996_v60, %v3156_v6 }
0x1c96   : > { %v3223_v61 = vpop.f32.mrf.mxu1 }
0x1c97   : > { %v3233_v31 = vadd.f32 %v3229_v28, %v4817_v52  ;;  %v3224_v13 = vadd.f32 %v3223_v61, %v3156_v6 }
0x1c99   : > { %v3232_v0 = vadd.f32 %v3224_v13, %v4820_v49  ;;  %v3237_v2 = vsel %vm544_vm2, %v3233_v31, 0.0  ;;  %v3275_v49 = vld [vmem:[%s4942_s7 + $0x18] sm:$0xff] }
0x1c9a   : > { %3238 = vadd.xlane.f32.xlu1 %v3237_v2  ;;  %3997 = vmatprep.subr.mxu0 %v3275_v49 }
0x1c9b   : > { %v3234_v25 = vsel %vm544_vm2, %v3232_v0, 0.0  ;;  %3998 = vmatpush3.msra.mxu0 %v3275_v49 }
0x1c9c   : > { %3235 = vadd.xlane.f32.xlu0 %v3234_v25  ;;  %3999 = vmatprep.subr.mxu0 %v3274_v18 }
0x1c9d   : > { %4000 = vmatpush3.msra.mxu0 %v3274_v18 }
0x1c9e   : > { %4001 = vmatprep.subr.mxu0 %v3273_v41 }
0x1c9f   : > { %4002 = vmatpush3.msra.mxu0 %v3273_v41 }
0x1ca0   : > { %4003 = vmatprep.subr.mxu0 %v3272_v42 }
0x1ca1   : > { %4004 = vmatpush3.msra.mxu0 %v3272_v42 }
0x1d23   : > { %v3239_v38 = vpop.xlane.xlu1 %3238 }
0x1d24   : > { %v3241_v7 = vmul.f32 0.03125, %v3239_v38 }
0x1d25   : > { %v3236_v11 = vpop.xlane.xlu0 %3235 }
0x1d26   : > { %v3243_v12 = vsub.f32 %v3233_v31, %v3241_v7  ;;  %v3240_v15 = vmul.f32 0.03125, %v3236_v11 }
0x1d28   : > { %v3242_v63 = vsub.f32 %v3232_v0, %v3240_v15  ;;  %v3245_v16 = vmul.f32 %v3243_v12, %v3243_v12 }
0x1d2a   : > { %v3249_v17 = vsel %vm544_vm2, %v3245_v16, 0.0  ;;  %v3244_v14 = vmul.f32 %v3242_v63, %v3242_v63 }
0x1d2b   : > { %3250 = vadd.xlane.f32.xlu1 %v3249_v17 }
0x1d2c   : > { %v3246_v52 = vsel %vm544_vm2, %v3244_v14, 0.0 }
0x1d2d   : > { %3247 = vadd.xlane.f32.xlu0 %v3246_v52 }
0x1db4   : > { %v3251_v43 = vpop.xlane.xlu1 %3250 }
0x1db5   : > { %v3253_v19 = vmul.f32 0.03125, %v3251_v43 }
0x1db6   : > { %v3248_v54 = vpop.xlane.xlu0 %3247 }
0x1db7   : > { %v3255_v20 = vadd.f32 1e-05, %v3253_v19  ;;  %v3252_v53 = vmul.f32 0.03125, %v3248_v54 }
0x1db9   : > { %4123 = vrsqrt.f32 %v3255_v20  ;;  %v3254_v1 = vadd.f32 1e-05, %v3252_v53 }
0x1dbb   : > { %4125 = vrsqrt.f32 %v3254_v1 }
0x1dc6   : > { %v4124_v22 = vpop.eup %4123 }
0x1dc7   : > { %v3259_v27 = vmul.f32 %v4124_v22, %v3243_v12 }
0x1dc8   : > { %v4126_v37 = vpop.eup %4125 }
0x1dc9   : > { %v3258_v5 = vmul.f32 %v4126_v37, %v3242_v63  ;;  %v3265_v44 = vmul.f32 %v3263_v24, %v3259_v27 }
0x1dcb   : > { %v3264_v32 = vmul.f32 %v3263_v24, %v3258_v5  ;;  %v3271_v26 = vadd.f32 %v3269_v29, %v3265_v44 }
0x1dcd   : > { %v3270_v33 = vadd.f32 %v3269_v29, %v3264_v32 }
0x1dcf   : > { %4005 = vmatprep.mubr.msk.f32.mxu0 %vm544_vm2, %v3270_v33 }
0x1dd0   : > { %4006 = vmatmul.mubr.msk.f32.vlgmr.msra.gmra.mxu0 %vm544_vm2, %v3271_v26 }
0x1e90   : > { %v4007_v3 = vpop.f32.mrf.mxu0 }
0x1e91   : > { %v3358_v4 = vadd.f32 %v4007_v3, %v3279_v34 }
0x1e92   : > { %v3352_v35 = vpop.f32.mrf.mxu0 }
0x1e93   : > { %v3353_v30 = vadd.f32 %v3352_v35, %v3279_v34  ;;  %3362 = vst [vmem:[%s348_s23 + $0x8] sm:$0xff] %v3358_v4 }
0x1e95   : > { %3361 = vst [vmem:[%s348_s23] sm:$0xff] %v3353_v30 }
0x1e96 PF: > { %s19_s30 = sadd.s32 1, %s4134_s30  }
0x1e97   : > { %p16_p5 = scmp.ge.s32.totalorder %s19_s30, 4  }
0x1e99   :  { %18 = sbr.rel (!%p16_p5) target bundleno = 1 (0x1), region = 92 }

</bundles_post_ra>
